<compile_context>
chip_gen: v6e
topology: v6e:2x2x1
jax: 0.10.0
libtpu: 0.0.40
codegen_flags: <defaults>
</compile_context>

<pallas_src>
import functools

import jax
import jax.numpy as jnp
from jax.experimental import pallas as pl
from jax.experimental.pallas import tpu as pltpu


def _round_up(x, m):
    return ((x + m - 1) // m) * m


def _pad2(x, rows, cols):
    return jnp.pad(x, ((0, rows - x.shape[0]), (0, cols - x.shape[1])))


def _largest_tile(total, candidates):
    for c in candidates:
        if c <= total and total % c == 0:
            return c
    return total


# ------------------------- Pallas kernels -------------------------

def make_gru_seq_kernel(num_layers, hidden_p):
    """Fused time-loop GRU kernel: one grid step == one timestep through the stack."""
    H = hidden_p

    def kernel(*refs):
        emb_ref = refs[0]                           # (1, batch_p, emb_p) block at t
        h0_ref = refs[1]                            # (L, batch_p, H) resident
        layer_refs = refs[2:2 + 4 * num_layers]     # per layer: Wcat, Ucat, Uh, bcat
        hs_out_ref = refs[2 + 4 * num_layers]       # (1, batch_p, H) block at t
        hfinal_ref = refs[3 + 4 * num_layers]       # (L, batch_p, H) resident output
        h_scr = refs[4 + 4 * num_layers]            # VMEM scratch (L, batch_p, H)

        t = pl.program_id(0)

        @pl.when(t == 0)
        def _():
            h_scr[...] = h0_ref[...]

        x = emb_ref[0]                              # (batch_p, in_p)
        for i in range(num_layers):
            wcat = layer_refs[4 * i][...]           # (in_p, 3H)
            ucat = layer_refs[4 * i + 1][...]       # (H, 2H)
            uh = layer_refs[4 * i + 2][...]         # (H, H)
            bcat = layer_refs[4 * i + 3][...]       # (1, 3H)
            h = h_scr[i]                            # (batch_p, H)

            gx = jnp.dot(x, wcat, preferred_element_type=jnp.float32) + bcat
            gh = jnp.dot(h, ucat, preferred_element_type=jnp.float32)

            r = jax.nn.sigmoid(gx[:, 0:H] + gh[:, 0:H])
            z = jax.nn.sigmoid(gx[:, H:2 * H] + gh[:, H:2 * H])
            h_tilde = jnp.tanh(
                gx[:, 2 * H:3 * H]
                + jnp.dot(r * h, uh, preferred_element_type=jnp.float32))
            h_new = (1.0 - z) * h + z * h_tilde

            h_scr[i] = h_new
            x = h_new

        hs_out_ref[0] = x                           # top-layer hidden for this t

        @pl.when(t == pl.num_programs(0) - 1)
        def _():
            hfinal_ref[...] = h_scr[...]

    return kernel


def out_proj_kernel(h_ref, w_ref, b_ref, o_ref):
    """Tiled GEMM: (tm, H) @ (H, tn) + bias, lane-dense output."""
    o_ref[...] = (jnp.dot(h_ref[...], w_ref[...],
                          preferred_element_type=jnp.float32) + b_ref[...])


# ------------------------- Parameter init (deterministic) -------------------------

def init_params(key, emb_size, hidden_size, vocab_size, num_layers):
    k = (1.0 / hidden_size) ** 0.5
    keys = iter(jax.random.split(key, 4 + num_layers * 9))
    params = {}
    params["emb"] = jax.random.uniform(
        next(keys), (vocab_size, emb_size), jnp.float32, -0.1, 0.1)
    layers = []
    for i in range(num_layers):
        in_size = emb_size if i == 0 else hidden_size

        def u(shape):
            return jax.random.uniform(next(keys), shape, jnp.float32, -k, k)

        layers.append(dict(
            # stored pre-transposed: (in_features, out_features)
            Wr=u((in_size, hidden_size)), Wz=u((in_size, hidden_size)),
            Wh=u((in_size, hidden_size)),
            Ur=u((hidden_size, hidden_size)), Uz=u((hidden_size, hidden_size)),
            Uh=u((hidden_size, hidden_size)),
            br=u((1, hidden_size)), bz=u((1, hidden_size)), bh=u((1, hidden_size)),
        ))
    params["layers"] = layers
    params["Wout"] = jax.random.uniform(
        next(keys), (hidden_size, vocab_size), jnp.float32, -0.1, 0.1)
    params["bout"] = jnp.zeros((1, vocab_size), jnp.float32)
    return params


def prepare_padded_params(params, emb_size, hidden_size, vocab_size, num_layers):
    """Fuse gate weights and zero-pad everything to (8,128)-aligned shapes (done once)."""
    emb_p = _round_up(emb_size, 128)
    hidden_p = _round_up(hidden_size, 128)
    vocab_p = _round_up(vocab_size, 128)

    pp = {"emb": jnp.pad(params["emb"], ((0, 0), (0, emb_p - emb_size)))}
    layers = []
    for i, lp in enumerate(params["layers"]):
        in_p = emb_p if i == 0 else hidden_p
        padw = lambda w, ip=in_p: _pad2(w, ip, hidden_p)
        padu = lambda u: _pad2(u, hidden_p, hidden_p)
        padb = lambda b: _pad2(b, 1, hidden_p)
        wcat = jnp.concatenate([padw(lp["Wr"]), padw(lp["Wz"]), padw(lp["Wh"])], axis=1)
        ucat = jnp.concatenate([padu(lp["Ur"]), padu(lp["Uz"])], axis=1)
        uh = padu(lp["Uh"])
        bcat = jnp.concatenate([padb(lp["br"]), padb(lp["bz"]), padb(lp["bh"])], axis=1)
        layers.append((wcat, ucat, uh, bcat))
    pp["layers"] = layers
    pp["Wout"] = _pad2(params["Wout"], hidden_p, vocab_p)
    pp["bout"] = _pad2(params["bout"], 1, vocab_p)
    return pp


# ------------------------- Forward pass -------------------------

@functools.partial(jax.jit, static_argnames=("vocab_size",))
def gru_forward(pp, inputs, hidden, *, vocab_size):
    """
    pp:      padded/fused params from prepare_padded_params
    inputs:  (seq_len, batch) int32
    hidden:  (num_layers, batch, hidden_size) f32
    returns: logits (seq_len, batch, vocab_size), final hidden (num_layers, batch, hidden)
    """
    seq_len, batch = inputs.shape
    num_layers, _, hidden_size = hidden.shape
    emb_p = pp["emb"].shape[1]
    hidden_p = pp["layers"][0][2].shape[0]
    vocab_p = pp["Wout"].shape[1]
    batch_p = _round_up(batch, 8)

    # Embedding gather stays in XLA (tiny table gather; no benefit in-kernel).
    emb = jnp.take(pp["emb"], inputs, axis=0)                      # (seq, batch, emb_p)
    emb = jnp.pad(emb, ((0, 0), (0, batch_p - batch), (0, 0)))     # (seq, batch_p, emb_p)
    h0 = jnp.pad(hidden, ((0, 0), (0, batch_p - batch),
                          (0, hidden_p - hidden_size)))            # (L, batch_p, H)

    flat_weights = []
    in_specs = [
        pl.BlockSpec((1, batch_p, emb_p), lambda t: (t, 0, 0)),              # streamed
        pl.BlockSpec((num_layers, batch_p, hidden_p), lambda t: (0, 0, 0)),  # resident
    ]
    for (wcat, ucat, uh, bcat) in pp["layers"]:
        for w in (wcat, ucat, uh, bcat):
            flat_weights.append(w)
            in_specs.append(pl.BlockSpec(w.shape, lambda t: (0, 0)))         # resident

    hs, hfinal_p = pl.pallas_call(
        make_gru_seq_kernel(num_layers, hidden_p),
        grid=(seq_len,),
        in_specs=in_specs,
        out_specs=(
            pl.BlockSpec((1, batch_p, hidden_p), lambda t: (t, 0, 0)),
            pl.BlockSpec((num_layers, batch_p, hidden_p), lambda t: (0, 0, 0)),
        ),
        out_shape=(
            jax.ShapeDtypeStruct((seq_len, batch_p, hidden_p), jnp.float32),
            jax.ShapeDtypeStruct((num_layers, batch_p, hidden_p), jnp.float32),
        ),
        scratch_shapes=[pltpu.VMEM((num_layers, batch_p, hidden_p), jnp.float32)],
        compiler_params=pltpu.CompilerParams(dimension_semantics=("arbitrary",)),
    )(emb, h0, *flat_weights)

    # Output projection hoisted out of the recurrence: one big lane-dense GEMM,
    # tiled over (row tiles, vocab tiles) with a "parallel" grid (megacore-friendly).
    rows = seq_len * batch_p                                   # multiple of 8
    h_flat = hs.reshape(rows, hidden_p)
    tm = _largest_tile(rows, (512, 256, 128, 64, 32, 16, 8))
    tn = _largest_tile(vocab_p, (512, 256, 128))
    logits_p = pl.pallas_call(
        out_proj_kernel,
        grid=(rows // tm, vocab_p // tn),
        in_specs=[pl.BlockSpec((tm, hidden_p), lambda i, j: (i, 0)),
                  pl.BlockSpec((hidden_p, tn), lambda i, j: (0, j)),
                  pl.BlockSpec((1, tn), lambda i, j: (0, j))],
        out_specs=pl.BlockSpec((tm, tn), lambda i, j: (i, j)),
        out_shape=jax.ShapeDtypeStruct((rows, vocab_p), jnp.float32),
        compiler_params=pltpu.CompilerParams(
            dimension_semantics=("parallel", "parallel")),
    )(h_flat, pp["Wout"], pp["bout"])

    logits = logits_p.reshape(seq_len, batch_p, vocab_p)[:, :batch, :vocab_size]
    hfinal = hfinal_p[:, :batch, :hidden_size]
    return logits, hfinal


# ------------------------- Pure-JAX reference for sanity -------------------------

def gru_forward_ref(params, inputs, hidden):
    seq_len, batch = inputs.shape
    num_layers = hidden.shape[0]
    emb_inputs = jnp.take(params["emb"], inputs, axis=0)
    hidden_states = [hidden[i] for i in range(num_layers)]
    logits_list = []
    for t in range(seq_len):
        layer_input = emb_inputs[t]
        new_hidden = []
        for i in range(num_layers):
            lp = params["layers"][i]
            x, h = layer_input, hidden_states[i]
            r = jax.nn.sigmoid(x @ lp["Wr"] + lp["br"] + h @ lp["Ur"])
            z = jax.nn.sigmoid(x @ lp["Wz"] + lp["bz"] + h @ lp["Uz"])
            h_tilde = jnp.tanh(x @ lp["Wh"] + lp["bh"] + (r * h) @ lp["Uh"])
            h_out = (1.0 - z) * h + z * h_tilde
            layer_input = h_out
            new_hidden.append(h_out)
        hidden_states = new_hidden
        logits_list.append(layer_input @ params["Wout"] + params["bout"])
    return jnp.stack(logits_list, 0), jnp.stack(hidden_states, 0)


# ------------------------- Main -------------------------

if __name__ == "__main__":
    emb_size = 32
    hidden_size = 32
    seq_len = 8
    batch_size = 2
    vocab_size = 64
    num_layers = 2
    dp_keep_prob = 1.0  # dropout is identity

    key = jax.random.PRNGKey(0)
    pkey, ikey = jax.random.split(key)
    params = init_params(pkey, emb_size, hidden_size, vocab_size, num_layers)
    padded = prepare_padded_params(params, emb_size, hidden_size, vocab_size, num_layers)

    inputs = jax.random.randint(ikey, (seq_len, batch_size), 0, vocab_size, dtype=jnp.int32)
    hidden0 = jnp.zeros((num_layers, batch_size, hidden_size), jnp.float32)

    logits, final_hidden = gru_forward(padded, inputs, hidden0, vocab_size=vocab_size)
    logits = jax.block_until_ready(logits)
    final_hidden = jax.block_until_ready(final_hidden)

    # sanity check against pure-JAX reference
    ref_logits, ref_hidden = gru_forward_ref(params, inputs, hidden0)
    assert logits.shape == (seq_len, batch_size, vocab_size)
    assert final_hidden.shape == (num_layers, batch_size, hidden_size)
    assert jnp.allclose(logits, ref_logits, atol=1e-5, rtol=1e-5)
    assert jnp.allclose(final_hidden, ref_hidden, atol=1e-5, rtol=1e-5)

    print("KERNEL_OK")
</pallas_src>

<mosaic_0001>
module attributes {stable_mosaic.version = 11 : i64} {
  func.func @out_proj_kernel(%arg0: i32, %arg1: i32, %arg2: memref<64x128xf32, #tpu.memory_space<vmem>>, %arg3: memref<128x128xf32, #tpu.memory_space<vmem>>, %arg4: memref<1x128xf32, #tpu.memory_space<vmem>>, %arg5: memref<64x128xf32, #tpu.memory_space<vmem>>) attributes {dimension_semantics = [#tpu.dimension_semantics<parallel>, #tpu.dimension_semantics<parallel>], iteration_bounds = array<i64: 1, 1>, scalar_prefetch = 0 : i64, scratch_operands = 0 : i64, tpu.core_type = #tpu.core_type<tc>, window_params = [{transform_indices = @transform_0, window_bounds = array<i64: 64, 128>}, {transform_indices = @transform_1, window_bounds = array<i64: 128, 128>}, {transform_indices = @transform_2, window_bounds = array<i64: 1, 128>}, {transform_indices = @transform_3, window_bounds = array<i64: 64, 128>}]} {
    %c0 = arith.constant 0 : index
    %c0_0 = arith.constant 0 : index
    %0 = vector.load %arg2[%c0, %c0_0] : memref<64x128xf32, #tpu.memory_space<vmem>>, vector<64x128xf32>
    %c0_1 = arith.constant 0 : index
    %c0_2 = arith.constant 0 : index
    %1 = vector.load %arg3[%c0_1, %c0_2] : memref<128x128xf32, #tpu.memory_space<vmem>>, vector<128x128xf32>
    %cst = arith.constant dense<0.000000e+00> : vector<64x128xf32>
    %2 = tpu.matmul %0, %1, %cst {dimension_numbers = #tpu.dot_dimension_numbers<[1], [0], [0], [1], [0, 0, 1, 1], [], []>} : vector<64x128xf32>, vector<128x128xf32>, vector<64x128xf32> -> vector<64x128xf32>
    %c0_3 = arith.constant 0 : index
    %c0_4 = arith.constant 0 : index
    %3 = vector.load %arg4[%c0_3, %c0_4] : memref<1x128xf32, #tpu.memory_space<vmem>>, vector<1x128xf32>
    %4 = vector.broadcast %3 : vector<1x128xf32> to vector<64x128xf32>
    %5 = arith.addf %2, %4 : vector<64x128xf32>
    %c0_5 = arith.constant 0 : index
    %c0_6 = arith.constant 0 : index
    %6 = vector.load %arg5[%c0_5, %c0_6] : memref<64x128xf32, #tpu.memory_space<vmem>>, vector<64x128xf32>
    tpu.vector_store %arg5[%c0_5, %c0_6], %5 {strides = array<i32>} : memref<64x128xf32, #tpu.memory_space<vmem>>, vector<64x128xf32>,
    return
  }
  func.func @transform_0(%arg0: i32, %arg1: i32) -> (i32, i32) {
    %c0_i32 = arith.constant 0 : i32
    %c0_i32_0 = arith.constant 0 : i32
    return %arg0, %c0_i32 : i32, i32
  }
  func.func @transform_1(%arg0: i32, %arg1: i32) -> (i32, i32) {
    %c0_i32 = arith.constant 0 : i32
    %c0_i32_0 = arith.constant 0 : i32
    return %c0_i32, %arg1 : i32, i32
  }
  func.func @transform_2(%arg0: i32, %arg1: i32) -> (i32, i32) {
    %c0_i32 = arith.constant 0 : i32
    %c0_i32_0 = arith.constant 0 : i32
    return %c0_i32, %arg1 : i32, i32
  }
  func.func @transform_3(%arg0: i32, %arg1: i32) -> (i32, i32) {
    %c0_i32 = arith.constant 0 : i32
    return %arg0, %arg1 : i32, i32
  }
}

module attributes {stable_mosaic.version = 11 : i64} {
  func.func @kernel(%arg0: i32, %arg1: memref<1x8x128xf32, #tpu.memory_space<vmem>>, %arg2: memref<2x8x128xf32, #tpu.memory_space<vmem>>, %arg3: memref<128x384xf32, #tpu.memory_space<vmem>>, %arg4: memref<128x256xf32, #tpu.memory_space<vmem>>, %arg5: memref<128x128xf32, #tpu.memory_space<vmem>>, %arg6: memref<1x384xf32, #tpu.memory_space<vmem>>, %arg7: memref<128x384xf32, #tpu.memory_space<vmem>>, %arg8: memref<128x256xf32, #tpu.memory_space<vmem>>, %arg9: memref<128x128xf32, #tpu.memory_space<vmem>>, %arg10: memref<1x384xf32, #tpu.memory_space<vmem>>, %arg11: memref<1x8x128xf32, #tpu.memory_space<vmem>>, %arg12: memref<2x8x128xf32, #tpu.memory_space<vmem>>, %arg13: memref<2x8x128xf32, #tpu.memory_space<vmem>>) attributes {dimension_semantics = [#tpu.dimension_semantics<arbitrary>], iteration_bounds = array<i64: 8>, scalar_prefetch = 0 : i64, scratch_operands = 1 : i64, tpu.core_type = #tpu.core_type<tc>, window_params = [{transform_indices = @transform_0, window_bounds = array<i64: 1, 8, 128>}, {pipeline_mode = #tpu.pipeline_mode<synchronous>, transform_indices = @transform_1, window_bounds = array<i64: 2, 8, 128>}, {pipeline_mode = #tpu.pipeline_mode<synchronous>, transform_indices = @transform_2, window_bounds = array<i64: 128, 384>}, {pipeline_mode = #tpu.pipeline_mode<synchronous>, transform_indices = @transform_3, window_bounds = array<i64: 128, 256>}, {pipeline_mode = #tpu.pipeline_mode<synchronous>, transform_indices = @transform_4, window_bounds = array<i64: 128, 128>}, {pipeline_mode = #tpu.pipeline_mode<synchronous>, transform_indices = @transform_5, window_bounds = array<i64: 1, 384>}, {pipeline_mode = #tpu.pipeline_mode<synchronous>, transform_indices = @transform_6, window_bounds = array<i64: 128, 384>}, {pipeline_mode = #tpu.pipeline_mode<synchronous>, transform_indices = @transform_7, window_bounds = array<i64: 128, 256>}, {pipeline_mode = #tpu.pipeline_mode<synchronous>, transform_indices = @transform_8, window_bounds = array<i64: 128, 128>}, {pipeline_mode = #tpu.pipeline_mode<synchronous>, transform_indices = @transform_9, window_bounds = array<i64: 1, 384>}, {transform_indices = @transform_10, window_bounds = array<i64: 1, 8, 128>}, {pipeline_mode = #tpu.pipeline_mode<synchronous>, transform_indices = @transform_11, window_bounds = array<i64: 2, 8, 128>}]} {
    %c0_i32 = arith.constant 0 : i32
    %0 = arith.cmpi eq, %arg0, %c0_i32 : i32
    %1 = arith.extui %0 : i1 to i32
    %c0_i32_0 = arith.constant 0 : i32
    %2 = arith.cmpi ne, %1, %c0_i32_0 : i32
    scf.if %2 {
      %c0_45 = arith.constant 0 : index
      %c0_46 = arith.constant 0 : index
      %c0_47 = arith.constant 0 : index
      %89 = vector.load %arg2[%c0_45, %c0_46, %c0_47] : memref<2x8x128xf32, #tpu.memory_space<vmem>>, vector<2x8x128xf32>
      %c0_48 = arith.constant 0 : index
      %c0_49 = arith.constant 0 : index
      %c0_50 = arith.constant 0 : index
      %90 = vector.load %arg13[%c0_48, %c0_49, %c0_50] : memref<2x8x128xf32, #tpu.memory_space<vmem>>, vector<2x8x128xf32>
      tpu.vector_store %arg13[%c0_48, %c0_49, %c0_50], %89 {strides = array<i32>} : memref<2x8x128xf32, #tpu.memory_space<vmem>>, vector<2x8x128xf32>,
    } else {
    }
    %c0 = arith.constant 0 : index
    %c0_1 = arith.constant 0 : index
    %c0_2 = arith.constant 0 : index
    %3 = vector.load %arg1[%c0, %c0_1, %c0_2] : memref<1x8x128xf32, #tpu.memory_space<vmem>>, vector<1x8x128xf32>
    %4 = vector.shape_cast %3 : vector<1x8x128xf32> to vector<8x128xf32>
    %c0_3 = arith.constant 0 : index
    %c0_4 = arith.constant 0 : index
    %5 = vector.load %arg3[%c0_3, %c0_4] : memref<128x384xf32, #tpu.memory_space<vmem>>, vector<128x384xf32>
    %c0_5 = arith.constant 0 : index
    %c0_6 = arith.constant 0 : index
    %6 = vector.load %arg4[%c0_5, %c0_6] : memref<128x256xf32, #tpu.memory_space<vmem>>, vector<128x256xf32>
    %c0_7 = arith.constant 0 : index
    %c0_8 = arith.constant 0 : index
    %7 = vector.load %arg5[%c0_7, %c0_8] : memref<128x128xf32, #tpu.memory_space<vmem>>, vector<128x128xf32>
    %c0_9 = arith.constant 0 : index
    %c0_10 = arith.constant 0 : index
    %8 = vector.load %arg6[%c0_9, %c0_10] : memref<1x384xf32, #tpu.memory_space<vmem>>, vector<1x384xf32>
    %c0_11 = arith.constant 0 : index
    %c0_12 = arith.constant 0 : index
    %c0_13 = arith.constant 0 : index
    %9 = vector.load %arg13[%c0_11, %c0_12, %c0_13] : memref<2x8x128xf32, #tpu.memory_space<vmem>>, vector<1x8x128xf32>
    %10 = vector.shape_cast %9 : vector<1x8x128xf32> to vector<8x128xf32>
    %cst = arith.constant dense<0.000000e+00> : vector<8x384xf32>
    %11 = tpu.matmul %4, %5, %cst {dimension_numbers = #tpu.dot_dimension_numbers<[1], [0], [0], [1], [0, 0, 1, 1], [], []>} : vector<8x128xf32>, vector<128x384xf32>, vector<8x384xf32> -> vector<8x384xf32>
    %12 = vector.broadcast %8 : vector<1x384xf32> to vector<8x384xf32>
    %13 = arith.addf %11, %12 : vector<8x384xf32>
    %cst_14 = arith.constant dense<0.000000e+00> : vector<8x256xf32>
    %14 = tpu.matmul %10, %6, %cst_14 {dimension_numbers = #tpu.dot_dimension_numbers<[1], [0], [0], [1], [0, 0, 1, 1], [], []>} : vector<8x128xf32>, vector<128x256xf32>, vector<8x256xf32> -> vector<8x256xf32>
    %15 = vector.extract_strided_slice %13 {offsets = [0, 0], sizes = [8, 128], strides = [1, 1]} : vector<8x384xf32> to vector<8x128xf32>
    %16 = vector.extract_strided_slice %14 {offsets = [0, 0], sizes = [8, 128], strides = [1, 1]} : vector<8x256xf32> to vector<8x128xf32>
    %17 = arith.addf %15, %16 : vector<8x128xf32>
    %18 = arith.negf %17 : vector<8x128xf32>
    %19 = math.exp %18 : vector<8x128xf32>
    %cst_15 = arith.constant 1.000000e+00 : f32
    %20 = vector.broadcast %cst_15 : f32 to vector<8x128xf32>
    %21 = arith.addf %20, %19 : vector<8x128xf32>
    %22 = arith.divf %20, %21 : vector<8x128xf32>
    %23 = vector.extract_strided_slice %13 {offsets = [0, 128], sizes = [8, 128], strides = [1, 1]} : vector<8x384xf32> to vector<8x128xf32>
    %24 = vector.extract_strided_slice %14 {offsets = [0, 128], sizes = [8, 128], strides = [1, 1]} : vector<8x256xf32> to vector<8x128xf32>
    %25 = arith.addf %23, %24 : vector<8x128xf32>
    %26 = arith.negf %25 : vector<8x128xf32>
    %27 = math.exp %26 : vector<8x128xf32>
    %cst_16 = arith.constant 1.000000e+00 : f32
    %28 = vector.broadcast %cst_16 : f32 to vector<8x128xf32>
    %29 = arith.addf %28, %27 : vector<8x128xf32>
    %30 = arith.divf %28, %29 : vector<8x128xf32>
    %31 = vector.extract_strided_slice %13 {offsets = [0, 256], sizes = [8, 128], strides = [1, 1]} : vector<8x384xf32> to vector<8x128xf32>
    %32 = arith.mulf %22, %10 : vector<8x128xf32>
    %cst_17 = arith.constant dense<0.000000e+00> : vector<8x128xf32>
    %33 = tpu.matmul %32, %7, %cst_17 {dimension_numbers = #tpu.dot_dimension_numbers<[1], [0], [0], [1], [0, 0, 1, 1], [], []>} : vector<8x128xf32>, vector<128x128xf32>, vector<8x128xf32> -> vector<8x128xf32>
    %34 = arith.addf %31, %33 : vector<8x128xf32>
    %35 = math.tanh %34 : vector<8x128xf32>
    %cst_18 = arith.constant 1.000000e+00 : f32
    %36 = vector.broadcast %cst_18 : f32 to vector<8x128xf32>
    %37 = arith.subf %36, %30 : vector<8x128xf32>
    %38 = arith.mulf %37, %10 : vector<8x128xf32>
    %39 = arith.mulf %30, %35 : vector<8x128xf32>
    %40 = arith.addf %38, %39 : vector<8x128xf32>
    %c0_19 = arith.constant 0 : index
    %c0_20 = arith.constant 0 : index
    %c0_21 = arith.constant 0 : index
    %41 = vector.load %arg13[%c0_19, %c0_20, %c0_21] : memref<2x8x128xf32, #tpu.memory_space<vmem>>, vector<1x8x128xf32>
    %42 = vector.shape_cast %41 : vector<1x8x128xf32> to vector<8x128xf32>
    %43 = vector.shape_cast %40 : vector<8x128xf32> to vector<1x8x128xf32>
    tpu.vector_store %arg13[%c0_19, %c0_20, %c0_21], %43 {strides = array<i32>} : memref<2x8x128xf32, #tpu.memory_space<vmem>>, vector<1x8x128xf32>,
    %c0_22 = arith.constant 0 : index
    %c0_23 = arith.constant 0 : index
    %44 = vector.load %arg7[%c0_22, %c0_23] : memref<128x384xf32, #tpu.memory_space<vmem>>, vector<128x384xf32>
    %c0_24 = arith.constant 0 : index
    %c0_25 = arith.constant 0 : index
    %45 = vector.load %arg8[%c0_24, %c0_25] : memref<128x256xf32, #tpu.memory_space<vmem>>, vector<128x256xf32>
    %c0_26 = arith.constant 0 : index
    %c0_27 = arith.constant 0 : index
    %46 = vector.load %arg9[%c0_26, %c0_27] : memref<128x128xf32, #tpu.memory_space<vmem>>, vector<128x128xf32>
    %c0_28 = arith.constant 0 : index
    %c0_29 = arith.constant 0 : index
    %47 = vector.load %arg10[%c0_28, %c0_29] : memref<1x384xf32, #tpu.memory_space<vmem>>, vector<1x384xf32>
    %c1 = arith.constant 1 : index
    %c0_30 = arith.constant 0 : index
    %c0_31 = arith.constant 0 : index
    %48 = vector.load %arg13[%c1, %c0_30, %c0_31] : memref<2x8x128xf32, #tpu.memory_space<vmem>>, vector<1x8x128xf32>
    %49 = vector.shape_cast %48 : vector<1x8x128xf32> to vector<8x128xf32>
    %cst_32 = arith.constant dense<0.000000e+00> : vector<8x384xf32>
    %50 = tpu.matmul %40, %44, %cst_32 {dimension_numbers = #tpu.dot_dimension_numbers<[1], [0], [0], [1], [0, 0, 1, 1], [], []>} : vector<8x128xf32>, vector<128x384xf32>, vector<8x384xf32> -> vector<8x384xf32>
    %51 = vector.broadcast %47 : vector<1x384xf32> to vector<8x384xf32>
    %52 = arith.addf %50, %51 : vector<8x384xf32>
    %cst_33 = arith.constant dense<0.000000e+00> : vector<8x256xf32>
    %53 = tpu.matmul %49, %45, %cst_33 {dimension_numbers = #tpu.dot_dimension_numbers<[1], [0], [0], [1], [0, 0, 1, 1], [], []>} : vector<8x128xf32>, vector<128x256xf32>, vector<8x256xf32> -> vector<8x256xf32>
    %54 = vector.extract_strided_slice %52 {offsets = [0, 0], sizes = [8, 128], strides = [1, 1]} : vector<8x384xf32> to vector<8x128xf32>
    %55 = vector.extract_strided_slice %53 {offsets = [0, 0], sizes = [8, 128], strides = [1, 1]} : vector<8x256xf32> to vector<8x128xf32>
    %56 = arith.addf %54, %55 : vector<8x128xf32>
    %57 = arith.negf %56 : vector<8x128xf32>
    %58 = math.exp %57 : vector<8x128xf32>
    %cst_34 = arith.constant 1.000000e+00 : f32
    %59 = vector.broadcast %cst_34 : f32 to vector<8x128xf32>
    %60 = arith.addf %59, %58 : vector<8x128xf32>
    %61 = arith.divf %59, %60 : vector<8x128xf32>
    %62 = vector.extract_strided_slice %52 {offsets = [0, 128], sizes = [8, 128], strides = [1, 1]} : vector<8x384xf32> to vector<8x128xf32>
    %63 = vector.extract_strided_slice %53 {offsets = [0, 128], sizes = [8, 128], strides = [1, 1]} : vector<8x256xf32> to vector<8x128xf32>
    %64 = arith.addf %62, %63 : vector<8x128xf32>
    %65 = arith.negf %64 : vector<8x128xf32>
    %66 = math.exp %65 : vector<8x128xf32>
    %cst_35 = arith.constant 1.000000e+00 : f32
    %67 = vector.broadcast %cst_35 : f32 to vector<8x128xf32>
    %68 = arith.addf %67, %66 : vector<8x128xf32>
    %69 = arith.divf %67, %68 : vector<8x128xf32>
    %70 = vector.extract_strided_slice %52 {offsets = [0, 256], sizes = [8, 128], strides = [1, 1]} : vector<8x384xf32> to vector<8x128xf32>
    %71 = arith.mulf %61, %49 : vector<8x128xf32>
    %cst_36 = arith.constant dense<0.000000e+00> : vector<8x128xf32>
    %72 = tpu.matmul %71, %46, %cst_36 {dimension_numbers = #tpu.dot_dimension_numbers<[1], [0], [0], [1], [0, 0, 1, 1], [], []>} : vector<8x128xf32>, vector<128x128xf32>, vector<8x128xf32> -> vector<8x128xf32>
    %73 = arith.addf %70, %72 : vector<8x128xf32>
    %74 = math.tanh %73 : vector<8x128xf32>
    %cst_37 = arith.constant 1.000000e+00 : f32
    %75 = vector.broadcast %cst_37 : f32 to vector<8x128xf32>
    %76 = arith.subf %75, %69 : vector<8x128xf32>
    %77 = arith.mulf %76, %49 : vector<8x128xf32>
    %78 = arith.mulf %69, %74 : vector<8x128xf32>
    %79 = arith.addf %77, %78 : vector<8x128xf32>
    %c1_38 = arith.constant 1 : index
    %c0_39 = arith.constant 0 : index
    %c0_40 = arith.constant 0 : index
    %80 = vector.load %arg13[%c1_38, %c0_39, %c0_40] : memref<2x8x128xf32, #tpu.memory_space<vmem>>, vector<1x8x128xf32>
    %81 = vector.shape_cast %80 : vector<1x8x128xf32> to vector<8x128xf32>
    %82 = vector.shape_cast %79 : vector<8x128xf32> to vector<1x8x128xf32>
    tpu.vector_store %arg13[%c1_38, %c0_39, %c0_40], %82 {strides = array<i32>} : memref<2x8x128xf32, #tpu.memory_space<vmem>>, vector<1x8x128xf32>,
    %c0_41 = arith.constant 0 : index
    %c0_42 = arith.constant 0 : index
    %c0_43 = arith.constant 0 : index
    %83 = vector.load %arg11[%c0_41, %c0_42, %c0_43] : memref<1x8x128xf32, #tpu.memory_space<vmem>>, vector<1x8x128xf32>
    %84 = vector.shape_cast %83 : vector<1x8x128xf32> to vector<8x128xf32>
    %85 = vector.shape_cast %79 : vector<8x128xf32> to vector<1x8x128xf32>
    tpu.vector_store %arg11[%c0_41, %c0_42, %c0_43], %85 {strides = array<i32>} : memref<1x8x128xf32, #tpu.memory_space<vmem>>, vector<1x8x128xf32>,
    %c7_i32 = arith.constant 7 : i32
    %86 = arith.cmpi eq, %arg0, %c7_i32 : i32
    %87 = arith.extui %86 : i1 to i32
    %c0_i32_44 = arith.constant 0 : i32
    %88 = arith.cmpi ne, %87, %c0_i32_44 : i32
    scf.if %88 {
      %c0_45 = arith.constant 0 : index
      %c0_46 = arith.constant 0 : index
      %c0_47 = arith.constant 0 : index
      %89 = vector.load %arg13[%c0_45, %c0_46, %c0_47] : memref<2x8x128xf32, #tpu.memory_space<vmem>>, vector<2x8x128xf32>
      %c0_48 = arith.constant 0 : index
      %c0_49 = arith.constant 0 : index
      %c0_50 = arith.constant 0 : index
      %90 = vector.load %arg12[%c0_48, %c0_49, %c0_50] : memref<2x8x128xf32, #tpu.memory_space<vmem>>, vector<2x8x128xf32>
      tpu.vector_store %arg12[%c0_48, %c0_49, %c0_50], %89 {strides = array<i32>} : memref<2x8x128xf32, #tpu.memory_space<vmem>>, vector<2x8x128xf32>,
    } else {
    }
    return
  }
  func.func @transform_0(%arg0: i32) -> (i32, i32, i32) {
    %c0_i32 = arith.constant 0 : i32
    %c0_i32_0 = arith.constant 0 : i32
    %c0_i32_1 = arith.constant 0 : i32
    return %arg0, %c0_i32, %c0_i32_0 : i32, i32, i32
  }
  func.func @transform_1(%arg0: i32) -> (i32, i32, i32) {
    %c0_i32 = arith.constant 0 : i32
    %c0_i32_0 = arith.constant 0 : i32
    %c0_i32_1 = arith.constant 0 : i32
    %c0_i32_2 = arith.constant 0 : i32
    return %c0_i32, %c0_i32_0, %c0_i32_1 : i32, i32, i32
  }
  func.func @transform_2(%arg0: i32) -> (i32, i32) {
    %c0_i32 = arith.constant 0 : i32
    %c0_i32_0 = arith.constant 0 : i32
    %c0_i32_1 = arith.constant 0 : i32
    return %c0_i32, %c0_i32_0 : i32, i32
  }
  func.func @transform_3(%arg0: i32) -> (i32, i32) {
    %c0_i32 = arith.constant 0 : i32
    %c0_i32_0 = arith.constant 0 : i32
    %c0_i32_1 = arith.constant 0 : i32
    return %c0_i32, %c0_i32_0 : i32, i32
  }
  func.func @transform_4(%arg0: i32) -> (i32, i32) {
    %c0_i32 = arith.constant 0 : i32
    %c0_i32_0 = arith.constant 0 : i32
    %c0_i32_1 = arith.constant 0 : i32
    return %c0_i32, %c0_i32_0 : i32, i32
  }
  func.func @transform_5(%arg0: i32) -> (i32, i32) {
    %c0_i32 = arith.constant 0 : i32
    %c0_i32_0 = arith.constant 0 : i32
    %c0_i32_1 = arith.constant 0 : i32
    return %c0_i32, %c0_i32_0 : i32, i32
  }
  func.func @transform_6(%arg0: i32) -> (i32, i32) {
    %c0_i32 = arith.constant 0 : i32
    %c0_i32_0 = arith.constant 0 : i32
    %c0_i32_1 = arith.constant 0 : i32
    return %c0_i32, %c0_i32_0 : i32, i32
  }
  func.func @transform_7(%arg0: i32) -> (i32, i32) {
    %c0_i32 = arith.constant 0 : i32
    %c0_i32_0 = arith.constant 0 : i32
    %c0_i32_1 = arith.constant 0 : i32
    return %c0_i32, %c0_i32_0 : i32, i32
  }
  func.func @transform_8(%arg0: i32) -> (i32, i32) {
    %c0_i32 = arith.constant 0 : i32
    %c0_i32_0 = arith.constant 0 : i32
    %c0_i32_1 = arith.constant 0 : i32
    return %c0_i32, %c0_i32_0 : i32, i32
  }
  func.func @transform_9(%arg0: i32) -> (i32, i32) {
    %c0_i32 = arith.constant 0 : i32
    %c0_i32_0 = arith.constant 0 : i32
    %c0_i32_1 = arith.constant 0 : i32
    return %c0_i32, %c0_i32_0 : i32, i32
  }
  func.func @transform_10(%arg0: i32) -> (i32, i32, i32) {
    %c0_i32 = arith.constant 0 : i32
    %c0_i32_0 = arith.constant 0 : i32
    %c0_i32_1 = arith.constant 0 : i32
    return %arg0, %c0_i32, %c0_i32_0 : i32, i32, i32
  }
  func.func @transform_11(%arg0: i32) -> (i32, i32, i32) {
    %c0_i32 = arith.constant 0 : i32
    %c0_i32_0 = arith.constant 0 : i32
    %c0_i32_1 = arith.constant 0 : i32
    %c0_i32_2 = arith.constant 0 : i32
    return %c0_i32, %c0_i32_0, %c0_i32_1 : i32, i32, i32
  }
}

</mosaic_0001>

<bundles_post_ra>
// kernel: gru_forward.3
= control target key start
LH: loop header
LB: loop body
LE: loop exit
PB: predicated region body
PF: predicated region fallthrough
CT: control target
= control target key end

     0   :  { %s382_s1 = inlined_call_operand.vmem [shape: f32[128,128], index: 1, kind: input, shape index: {}]   ;;  %s383_s0 = inlined_call_operand.vmem [shape: f32[64,128], index: 0, kind: input, shape index: {}]   ;;  %s384_s2 = inlined_call_operand.vmem [shape: f32[1,128], index: 2, kind: input, shape index: {}]   ;;  %s385_s3 = inlined_call_operand.vmem [shape: f32[64,128], index: 3, kind: output, shape index: {}]  }
   0x1   :  { %v37_v0 = vld [vmem:[%s382_s1 + $0x78] sm:$0xff]  ;;  %v36_v1 = vld [vmem:[%s382_s1 + $0x70] sm:$0xff]  ;;  %v35_v2 = vld [vmem:[%s382_s1 + $0x68] sm:$0xff] }
   0x2   :  { %187 = vmatprep.subr.mxu0 %v37_v0  ;;  %231 = vmatprep.subr.mxu1 %v37_v0  ;;  %v34_v3 = vld [vmem:[%s382_s1 + $0x60] sm:$0xff]  ;;  %v33_v4 = vld [vmem:[%s382_s1 + $0x58] sm:$0xff]  ;;  %v32_v5 = vld [vmem:[%s382_s1 + $0x50] sm:$0xff] }
   0x3   :  { %188 = vmatpush3.msra.mxu0 %v37_v0  ;;  %247 = vmatpush3.msra.mxu1 %v37_v0  ;;  %v31_v6 = vld [vmem:[%s382_s1 + $0x48] sm:$0xff]  ;;  %v30_v7 = vld [vmem:[%s382_s1 + $0x40] sm:$0xff]  ;;  %v29_v8 = vld [vmem:[%s382_s1 + $0x38] sm:$0xff] }
   0x4   :  { %189 = vmatprep.subr.mxu0 %v36_v1  ;;  %232 = vmatprep.subr.mxu1 %v36_v1  ;;  %v28_v9 = vld [vmem:[%s382_s1 + $0x30] sm:$0xff]  ;;  %v27_v10 = vld [vmem:[%s382_s1 + $0x28] sm:$0xff]  ;;  %v26_v11 = vld [vmem:[%s382_s1 + $0x20] sm:$0xff] }
   0x5   :  { %190 = vmatpush3.msra.mxu0 %v36_v1  ;;  %248 = vmatpush3.msra.mxu1 %v36_v1  ;;  %v25_v12 = vld [vmem:[%s382_s1 + $0x18] sm:$0xff]  ;;  %v24_v13 = vld [vmem:[%s382_s1 + $0x10] sm:$0xff]  ;;  %v23_v14 = vld [vmem:[%s382_s1 + $0x8] sm:$0xff] }
   0x6   :  { %191 = vmatprep.subr.mxu0 %v35_v2  ;;  %233 = vmatprep.subr.mxu1 %v35_v2  ;;  %v22_v15 = vld [vmem:[%s382_s1] sm:$0xff]  ;;  %v15_v18 = vld [vmem:[%s383_s0 + $0x8] sm:$0xff]  ;;  %v16_v20 = vld [vmem:[%s383_s0 + $0x10] sm:$0xff] }
   0x7   :  { %192 = vmatpush3.msra.mxu0 %v35_v2  ;;  %249 = vmatpush3.msra.mxu1 %v35_v2  ;;  %v14_v16 = vld [vmem:[%s383_s0] sm:$0xff]  ;;  %v19_v19 = vld [vmem:[%s383_s0 + $0x28] sm:$0xff]  ;;  %v20_v21 = vld [vmem:[%s383_s0 + $0x30] sm:$0xff] }
   0x8   :  { %193 = vmatprep.subr.mxu0 %v34_v3  ;;  %234 = vmatprep.subr.mxu1 %v34_v3  ;;  %v18_v17 = vld [vmem:[%s383_s0 + $0x20] sm:$0xff]  ;;  %v17_v22 = vld [vmem:[%s383_s0 + $0x18] sm:$0xff] }
   0x9   :  { %194 = vmatpush3.msra.mxu0 %v34_v3  ;;  %250 = vmatpush3.msra.mxu1 %v34_v3  ;;  %v21_v23 = vld [vmem:[%s383_s0 + $0x38] sm:$0xff]  ;;  %v162_v24 = vld [vmem:[%s384_s2] ss:$0 sm:$0xff] }
   0xa   :  { %195 = vmatprep.subr.mxu0 %v33_v4  ;;  %235 = vmatprep.subr.mxu1 %v33_v4 }
   0xb   :  { %196 = vmatpush3.msra.mxu0 %v33_v4  ;;  %251 = vmatpush3.msra.mxu1 %v33_v4 }
   0xc   :  { %197 = vmatprep.subr.mxu0 %v32_v5  ;;  %236 = vmatprep.subr.mxu1 %v32_v5 }
   0xd   :  { %198 = vmatpush3.msra.mxu0 %v32_v5  ;;  %252 = vmatpush3.msra.mxu1 %v32_v5 }
   0xe   :  { %199 = vmatprep.subr.mxu0 %v31_v6  ;;  %237 = vmatprep.subr.mxu1 %v31_v6 }
   0xf   :  { %200 = vmatpush3.msra.mxu0 %v31_v6  ;;  %253 = vmatpush3.msra.mxu1 %v31_v6 }
  0x10   :  { %201 = vmatprep.subr.mxu0 %v30_v7  ;;  %238 = vmatprep.subr.mxu1 %v30_v7 }
  0x11   :  { %202 = vmatpush3.msra.mxu0 %v30_v7  ;;  %254 = vmatpush3.msra.mxu1 %v30_v7 }
  0x12   :  { %203 = vmatprep.subr.mxu0 %v29_v8  ;;  %239 = vmatprep.subr.mxu1 %v29_v8 }
  0x13   :  { %204 = vmatpush3.msra.mxu0 %v29_v8  ;;  %255 = vmatpush3.msra.mxu1 %v29_v8 }
  0x14   :  { %205 = vmatprep.subr.mxu0 %v28_v9  ;;  %240 = vmatprep.subr.mxu1 %v28_v9 }
  0x15   :  { %206 = vmatpush3.msra.mxu0 %v28_v9  ;;  %256 = vmatpush3.msra.mxu1 %v28_v9 }
  0x16   :  { %207 = vmatprep.subr.mxu0 %v27_v10  ;;  %241 = vmatprep.subr.mxu1 %v27_v10 }
  0x17   :  { %208 = vmatpush3.msra.mxu0 %v27_v10  ;;  %257 = vmatpush3.msra.mxu1 %v27_v10 }
  0x18   :  { %209 = vmatprep.subr.mxu0 %v26_v11  ;;  %242 = vmatprep.subr.mxu1 %v26_v11 }
  0x19   :  { %210 = vmatpush3.msra.mxu0 %v26_v11  ;;  %258 = vmatpush3.msra.mxu1 %v26_v11 }
  0x1a   :  { %211 = vmatprep.subr.mxu0 %v25_v12  ;;  %243 = vmatprep.subr.mxu1 %v25_v12 }
  0x1b   :  { %212 = vmatpush3.msra.mxu0 %v25_v12  ;;  %259 = vmatpush3.msra.mxu1 %v25_v12 }
  0x1c   :  { %213 = vmatprep.subr.mxu0 %v24_v13  ;;  %244 = vmatprep.subr.mxu1 %v24_v13 }
  0x1d   :  { %214 = vmatpush3.msra.mxu0 %v24_v13  ;;  %260 = vmatpush3.msra.mxu1 %v24_v13 }
  0x1e   :  { %215 = vmatprep.subr.mxu0 %v23_v14  ;;  %245 = vmatprep.subr.mxu1 %v23_v14 }
  0x1f   :  { %216 = vmatpush3.msra.mxu0 %v23_v14  ;;  %261 = vmatpush3.msra.mxu1 %v23_v14 }
  0x20   :  { %217 = vmatprep.subr.mxu0 %v22_v15  ;;  %246 = vmatprep.subr.mxu1 %v22_v15 }
  0x21   :  { %218 = vmatpush3.msra.mxu0 %v22_v15  ;;  %262 = vmatpush3.msra.mxu1 %v22_v15 }
  0x22   :  { %219 = vmatprep.mubr.f32.mxu0 %v14_v16  ;;  %225 = vmatprep.mubr.f32.mxu1 %v18_v17 }
  0x23   :  { %220 = vmatmul.mubr.f32.vlgmr.msra.gmra.mxu0 %v15_v18  ;;  %226 = vmatmul.mubr.f32.vlgmr.msra.gmra.mxu1 %v19_v19 }
  0x24   :  { %222 = vmatprep.mubr.f32.mxu0 %v16_v20  ;;  %228 = vmatprep.mubr.f32.mxu1 %v20_v21 }
  0x27   :  { %223 = vmatmul.mubr.f32.gmra.mxu0 %v17_v22  ;;  %229 = vmatmul.mubr.f32.gmra.mxu1 %v21_v23 }
  0xe3   :  { %v221_v25 = vpop.f32.mrf.mxu0  ;;  %v227_v26 = vpop.f32.mrf.mxu1 }
  0xe4   :  { %v117_v27 = vadd.f32 %v221_v25, %v162_v24  ;;  %v137_v28 = vadd.f32 %v227_v26, %v162_v24 }
  0xe5   :  { %v111_v29 = vpop.f32.mrf.mxu0  ;;  %v131_v30 = vpop.f32.mrf.mxu1 }
  0xe6   :  { %151 = vst [vmem:[%s385_s3 + $0x8] sm:$0xff] %v117_v27  ;;  %155 = vst [vmem:[%s385_s3 + $0x28] sm:$0xff] %v137_v28  ;;  %v112_v31 = vadd.f32 %v162_v24, %v111_v29  ;;  %v132_v32 = vadd.f32 %v162_v24, %v131_v30 }
  0xe7   :  { %v224_v33 = vpop.f32.mrf.mxu0  ;;  %v230_v34 = vpop.f32.mrf.mxu1 }
  0xe8   :  { %150 = vst [vmem:[%s385_s3] sm:$0xff] %v112_v31  ;;  %154 = vst [vmem:[%s385_s3 + $0x20] sm:$0xff] %v132_v32  ;;  %v127_v35 = vadd.f32 %v224_v33, %v162_v24  ;;  %v147_v36 = vadd.f32 %v230_v34, %v162_v24 }
  0xe9   :  { %v121_v37 = vpop.f32.mrf.mxu0  ;;  %v141_v38 = vpop.f32.mrf.mxu1 }
  0xea   :  { %153 = vst [vmem:[%s385_s3 + $0x18] sm:$0xff] %v127_v35  ;;  %157 = vst [vmem:[%s385_s3 + $0x38] sm:$0xff] %v147_v36  ;;  %v122_v39 = vadd.f32 %v162_v24, %v121_v37  ;;  %v142_v40 = vadd.f32 %v162_v24, %v141_v38 }
  0xec   :  { %152 = vst [vmem:[%s385_s3 + $0x10] sm:$0xff] %v122_v39  ;;  %156 = vst [vmem:[%s385_s3 + $0x30] sm:$0xff] %v142_v40 }

// kernel: gru_forward.2
= control target key start
LH: loop header
LB: loop body
LE: loop exit
PB: predicated region body
PF: predicated region fallthrough
CT: control target
= control target key end

     0   :  { %17 = vsyncpa [#allocation4], 0  ;;  %s2307_s0 = inlined_call_operand.vmem [shape: f32[8,8,128], index: 0, kind: input, shape index: {}]   ;;  %s2308_s1 = inlined_call_operand.vmem [shape: f32[2,8,128], index: 1, kind: input, shape index: {}]   ;;  %s2309_s2 = inlined_call_operand.hbm [shape: f32[128,384], index: 2, kind: input, shape index: {}]   ;;  %s2310_s3 = inlined_call_operand.vmem [shape: f32[128,256], index: 3, kind: input, shape index: {}]   ;;  %s2311_s4 = inlined_call_operand.hbm [shape: f32[128,128], index: 4, kind: input, shape index: {}]   ;;  %s2312_s5 = inlined_call_operand.vmem [shape: f32[1,384], index: 5, kind: input, shape index: {}]   ;;  %s2313_s6 = inlined_call_operand.hbm [shape: f32[128,384], index: 6, kind: input, shape index: {}]   ;;  %s2314_s7 = inlined_call_operand.hbm [shape: f32[128,256], index: 7, kind: input, shape index: {}]   ;;  %s2315_s8 = inlined_call_operand.hbm [shape: f32[128,128], index: 8, kind: input, shape index: {}]   ;;  %s2316_s9 = inlined_call_operand.vmem [shape: f32[1,384], index: 9, kind: input, shape index: {}]   ;;  %s2317_s10 = inlined_call_operand.vmem [shape: f32[8,8,128], index: 10, kind: output, shape index: {0}]   ;;  %s2318_s11 = inlined_call_operand.vmem [shape: f32[2,8,128], index: 11, kind: output, shape index: {1}]  }
   0x1   :  { %18 = vsyncpa [#allocation6], 0 }
   0x2   :  { %19 = vsyncpa [#allocation9], 0  ;;  %s1960_s17 = smov 0  }
   0x3 LB: > { %s1887_s18 = smov [#allocation5]   ;;  %s1966_s20 = sadd.s32 4294967295, %s1885_s17   ;;  %s1885_s17 = sphi %s1960_s17, %s25_s17  }
   0x4   : > { %s323_s19 = sshll.u32 %s1887_s18, 4  ;;  %p1419_p0 = scmp.ge.s32.totalorder %s1885_s17, 1  ;;  %s324_s19 = int_to_ptr.vmem [resolvable:$true] %s323_s19 }
   0x5   : > { %p292_p1 = scmp.lt.s32.totalorder %s1885_s17, 9  ;;  %p2319_p3 = scmp.eq.s32.totalorder %s1966_s20, 0 }
   0x6   : > { %s1888_s22 = smov [#allocation8]   ;;  %s1889_s25 = smov [#allocation3]  }
   0x7   : > { %p1972_p4 = pnand %p1419_p0, %p292_p1  ;;  %s352_s23 = sshll.u32 %s1888_s22, 4  ;;  %s1978_s23 = int_to_ptr.vmem [resolvable:$true] %s352_s23 }
   0x8   : > { %s1986_s26 = sshll.u32 %s1889_s25, 4  ;;  %s1748_s28 = scalar_lea.vmem %s324_s19, 2048  ;;  %s308_s26 = int_to_ptr.vmem [resolvable:$true] %s1986_s26 }
   0x9   : > { %s2321_s21 = scalar_select %p1972_p4, 1, 0 }
   0xa   : > { %p1670_p5 = pneg %p1972_p4  ;;  %p1749_p8 = scmp.ne.s32.totalorder %s324_s19, %s1748_s28 }
   0xb   : > { %p1756_p11 = scmp.lt.s32.totalorder %s324_s19, %s324_s19  ;;  %p1757_p12 = scmp.lt.s32.totalorder %s1748_s28, %s1748_s28 }
   0xc   : > { %p1982_p6 = pnand %p2319_p3, %p1670_p5 }
   0xd   : > { %p1758_p13 = por %p1757_p12, %p1756_p11 }
   0xe   : > { %p1990_p7 = pneg %p1982_p6 }
  0x10   : > { %p1751_p9 = pnand %p1749_p8, %p1990_p7 }
  0x12   : > { %p1752_p10 = pneg %p1751_p9 }
  0x14   : > { %p1759_p0 = pnand %p1758_p13, %p1752_p10 }
  0x16   : > { %1762 = shalt.err (!%p1759_p0)
}
  0x17   : > { %s1890_s29 = smov 128   ;;  %s1891_s30 = smov 8  }
  0x18   : > { %1676 = dma.hbm_to_vmem [thread:$0]  (!%p1982_p6), %s2311_s4, 2048, %s324_s19, [#allocation6], %s1890_s29, %s1890_s29, %s1891_s30  }
  0x19   : > { %s1774_s14 = scalar_lea.vmem %s1978_s23, 4096  ;;  %p1782_p9 = scmp.lt.s32.totalorder %s1978_s23, %s1978_s23 }
  0x1a   : > { %p1775_p1 = scmp.ne.s32.totalorder %s1978_s23, %s1774_s14  ;;  %p1783_p10 = scmp.lt.s32.totalorder %s1774_s14, %s1774_s14 }
  0x1c   : > { %p1777_p5 = pnand %p1775_p1, %p1990_p7  ;;  %p1784_p11 = por %p1783_p10, %p1782_p9 }
  0x1e   : > { %p1778_p8 = pneg %p1777_p5 }
  0x20   : > { %p1785_p12 = pnand %p1784_p11, %p1778_p8 }
  0x22   : > { %1788 = shalt.err (!%p1785_p12)
}
  0x23   : > { %s1892_s15 = smov 256   ;;  %s1893_s16 = smov 16  }
  0x24   : > { %1682 = dma.hbm_to_vmem [thread:$0]  (!%p1982_p6), %s2314_s7, 4096, %s1978_s23, [#allocation9], %s1892_s15, %s1892_s15, %s1893_s16  }
  0x25   : > { %s1800_s22 = scalar_lea.vmem %s308_s26, 6144  ;;  %p1808_p5 = scmp.lt.s32.totalorder %s308_s26, %s308_s26 }
  0x26   : > { %p1801_p13 = scmp.ne.s32.totalorder %s308_s26, %s1800_s22  ;;  %p1809_p8 = scmp.lt.s32.totalorder %s1800_s22, %s1800_s22 }
  0x28   : > { %p1803_p0 = pnand %p1801_p13, %p1990_p7  ;;  %p1810_p9 = por %p1809_p8, %p1808_p5 }
  0x2a   : > { %p1804_p1 = pneg %p1803_p0 }
  0x2c   : > { %p1811_p10 = pnand %p1810_p9, %p1804_p1 }
  0x2e   : > { %1814 = shalt.err (!%p1811_p10)
}
  0x2f   : > { %s1894_s25 = smov 384   ;;  %s1895_s28 = smov 24  }
  0x30   : > { %1673 = dma.hbm_to_vmem [thread:$0]  (!%p1982_p6), %s2309_s2, 6144, %s308_s26, [#allocation4], %s1894_s25, %s1894_s25, %s1895_s28  }
  0x31   : > { %s1896_s23 = smov [#allocation7]   ;;  %s1897_s15 = smov [#allocation10]  }
  0x32   : > { %s339_s14 = sshll.u32 %s1896_s23, 4  ;;  %s365_s16 = sshll.u32 %s1897_s15, 4  ;;  %s340_s14 = int_to_ptr.vmem [resolvable:$true] %s339_s14  ;;  %s366_s16 = int_to_ptr.vmem [resolvable:$true] %s365_s16 }
  0x33   : > { %s1826_s18 = scalar_lea.vmem %s340_s14, 6144  ;;  %p1834_p0 = scmp.lt.s32.totalorder %s340_s14, %s340_s14 }
  0x34   : > { %p1827_p11 = scmp.ne.s32.totalorder %s340_s14, %s1826_s18  ;;  %p1835_p1 = scmp.lt.s32.totalorder %s1826_s18, %s1826_s18 }
  0x36   : > { %p1829_p12 = pnand %p1827_p11, %p1990_p7  ;;  %p1836_p5 = por %p1835_p1, %p1834_p0 }
  0x38   : > { %p1830_p13 = pneg %p1829_p12 }
  0x3a   : > { %p1837_p8 = pnand %p1836_p5, %p1830_p13 }
  0x3c   : > { %1840 = shalt.err (!%p1837_p8)
}
  0x3d   : > { %1679 = dma.hbm_to_vmem [thread:$0]  (!%p1982_p6), %s2313_s6, 6144, %s340_s14, [#allocation6], %s1894_s25, %s1894_s25, %s1895_s28  }
  0x3e   : > { %s1852_s22 = scalar_lea.vmem %s366_s16, 2048  ;;  %p1860_p3 = scmp.lt.s32.totalorder %s366_s16, %s366_s16 }
  0x3f   : > { %p1853_p9 = scmp.ne.s32.totalorder %s366_s16, %s1852_s22  ;;  %p1861_p11 = scmp.lt.s32.totalorder %s1852_s22, %s1852_s22 }
  0x41   : > { %p1855_p10 = pnand %p1853_p9, %p1990_p7  ;;  %p1862_p12 = por %p1861_p11, %p1860_p3 }
  0x43   : > { %p1856_p2 = pneg %p1855_p10 }
  0x45   : > { %p1863_p4 = pnand %p1862_p12, %p1856_p2 }
  0x47   : > { %1866 = shalt.err (!%p1863_p4)
}
  0x48   : > { %1685 = dma.hbm_to_vmem [thread:$0]  (!%p1982_p6), %s2315_s8, 2048, %s366_s16, [#allocation9], %s1890_s29, %s1890_s29, %s1891_s30  }
  0x49   : > { %p2324_p13 = scmp.ne.s32.totalorder %s2321_s21, 0 }
  0x4a   : > { %p2325_p7 = scmp.eq.s32.totalorder (!%p2324_p13), %s1966_s20, 0 }
  0x4b   : > { %391 = sbr.rel (%p2324_p13) target bundleno = 1088 (0x440), region = 60 }
  0x50   : > { %1872 = dma.done.wait (%p2325_p7), [#allocation4], 6144   ;;  %p2326_p0 = pmov %p2325_p7 }
  0x52   : > { %1874 = vsyncadd (%p2326_p0), [#allocation4], 4294961152  ;;  %p2327_p2 = pmov %p2326_p0 }
  0x53   : > { %p2328_p3 = pmov %p2326_p0 }
  0x54   : > { %1876 = dma.done.wait (%p2327_p2), [#allocation6], 8192  }
  0x55   : > { %1878 = vsyncadd (%p2328_p3), [#allocation6], 4294959104  ;;  %p2329_p4 = pmov %p2326_p0 }
  0x56   : > { %p2330_p6 = pmov %p2326_p0 }
  0x57   : > { %1880 = dma.done.wait (%p2329_p4), [#allocation9], 6144  }
  0x58   : > { %1882 = vsyncadd (%p2330_p6), [#allocation9], 4294961152  ;;  %p445_p1 = scmp.lt.s32.totalorder %s1966_s20, 7  ;;  %p2331_p5 = scmp.ne.s32.totalorder %s1966_s20, 0 }
  0x5a   : > { %s446_s21 = scalar_select %p445_p1, %s1966_s20, 7 }
  0x5b   : > { %456 = sbr.rel (%p2331_p5) target bundleno = 98 (0x62), region = 84 }
  0x5c   : > { %s1432_s24 = sshll.u32 %s446_s21, 3 }
  0x5d   : > { %s2060_s30 = scalar_lea.vmem %s2307_s0, %s1432_s24  ;;  %s2065_s23 = scalar_lea.vmem %s2317_s10, %s1432_s24 }
  0x60   : > { %v457_v0 = vld [vmem:[%s2308_s1] sm:$0xff]  ;;  %v458_v1 = vld [vmem:[%s2308_s1 + $0x8] sm:$0xff] }
  0x61   : > { %459 = vst [vmem:[#allocation2] sm:$0xff] %v457_v0  ;;  %460 = vst [vmem:[#allocation2 + $0x8] sm:$0xff] %v458_v1 }
  0x62 PF: > { %v508_v2 = vld [vmem:[#allocation3 + $0x170] sm:$0xff]  ;;  %v507_v3 = vld [vmem:[#allocation3 + $0x168] sm:$0xff]  ;;  %v505_v4 = vld [vmem:[#allocation3 + $0x158] sm:$0xff]  ;;  %v1898_v6 = vmov 0.0   ;;  %vm1899_vm0 = vmmov 0   ;;  %p1439_p8 = scmp.ne.s32.totalorder %s1966_s20, 7 }
  0x63   : > { %576 = vmatprep.subr.mxu0 %v508_v2  ;;  %v504_v5 = vld [vmem:[#allocation3 + $0x150] sm:$0xff]  ;;  %640 = vmatprep.mubr.f32.mxu0 %v1898_v6  ;;  %v502_v7 = vld [vmem:[#allocation3 + $0x140] sm:$0xff]  ;;  %v501_v8 = vld [vmem:[#allocation3 + $0x138] sm:$0xff] }
  0x64   : > { %577 = vmatpush1.msra.mxu0 %v507_v3  ;;  %1510 = vmatprep.subr.mxu1 %v1898_v6  ;;  %v499_v9 = vld [vmem:[#allocation3 + $0x128] sm:$0xff]  ;;  %v498_v10 = vld [vmem:[#allocation3 + $0x120] sm:$0xff]  ;;  %v496_v11 = vld [vmem:[#allocation3 + $0x110] sm:$0xff] }
  0x65   : > { %578 = vmatprep.subr.mxu0 %v505_v4  ;;  %v495_v12 = vld [vmem:[#allocation3 + $0x108] sm:$0xff]  ;;  %v493_v13 = vld [vmem:[#allocation3 + $0xf8] sm:$0xff]  ;;  %v492_v14 = vld [vmem:[#allocation3 + $0xf0] sm:$0xff]  ;;  %1542 = vmatprep.mubr.msk.f32.mxu1 %vm1899_vm0, %v1898_v6 }
  0x66   : > { %579 = vmatpush1.msra.mxu0 %v504_v5  ;;  %v490_v15 = vld [vmem:[#allocation3 + $0xe0] sm:$0xff]  ;;  %v489_v16 = vld [vmem:[#allocation3 + $0xd8] sm:$0xff]  ;;  %v487_v17 = vld [vmem:[#allocation3 + $0xc8] sm:$0xff] }
  0x67   : > { %580 = vmatprep.subr.mxu0 %v502_v7  ;;  %v486_v18 = vld [vmem:[#allocation3 + $0xc0] sm:$0xff]  ;;  %v484_v19 = vld [vmem:[#allocation3 + $0xb0] sm:$0xff]  ;;  %v483_v20 = vld [vmem:[#allocation3 + $0xa8] sm:$0xff] }
  0x68   : > { %581 = vmatpush1.msra.mxu0 %v501_v8  ;;  %v481_v21 = vld [vmem:[#allocation3 + $0x98] sm:$0xff]  ;;  %v480_v22 = vld [vmem:[#allocation3 + $0x90] sm:$0xff]  ;;  %v478_v23 = vld [vmem:[#allocation3 + $0x80] sm:$0xff] }
  0x69   : > { %582 = vmatprep.subr.mxu0 %v499_v9  ;;  %v477_v24 = vld [vmem:[#allocation3 + $0x78] sm:$0xff]  ;;  %v475_v25 = vld [vmem:[#allocation3 + $0x68] sm:$0xff]  ;;  %v474_v26 = vld [vmem:[#allocation3 + $0x60] sm:$0xff] }
  0x6a   : > { %583 = vmatpush1.msra.mxu0 %v498_v10  ;;  %v472_v27 = vld [vmem:[#allocation3 + $0x50] sm:$0xff]  ;;  %v471_v28 = vld [vmem:[#allocation3 + $0x48] sm:$0xff]  ;;  %v469_v29 = vld [vmem:[#allocation3 + $0x38] sm:$0xff] }
  0x6b   : > { %584 = vmatprep.subr.mxu0 %v496_v11  ;;  %v468_v30 = vld [vmem:[#allocation3 + $0x30] sm:$0xff]  ;;  %v466_v31 = vld [vmem:[#allocation3 + $0x20] sm:$0xff]  ;;  %v465_v32 = vld [vmem:[#allocation3 + $0x18] sm:$0xff] }
  0x6c   : > { %585 = vmatpush1.msra.mxu0 %v495_v12  ;;  %v463_v33 = vld [vmem:[#allocation3 + $0x8] sm:$0xff]  ;;  %v462_v34 = vld [vmem:[#allocation3] sm:$0xff]  ;;  %v2078_v35 = vld [vmem:[%s2060_s30] sm:$0xff] }
  0x6d   : > { %586 = vmatprep.subr.mxu0 %v493_v13  ;;  %v541_v36 = vld [vmem:[%s2310_s3 + $0xf8] sm:$0xff]  ;;  %v540_v37 = vld [vmem:[%s2310_s3 + $0xf0] sm:$0xff]  ;;  %v539_v38 = vld [vmem:[%s2310_s3 + $0xe8] sm:$0xff] }
  0x6e   : > { %587 = vmatpush1.msra.mxu0 %v492_v14  ;;  %v538_v39 = vld [vmem:[%s2310_s3 + $0xe0] sm:$0xff]  ;;  %v537_v40 = vld [vmem:[%s2310_s3 + $0xd8] sm:$0xff]  ;;  %v536_v41 = vld [vmem:[%s2310_s3 + $0xd0] sm:$0xff] }
  0x6f   : > { %588 = vmatprep.subr.mxu0 %v490_v15  ;;  %v535_v42 = vld [vmem:[%s2310_s3 + $0xc8] sm:$0xff]  ;;  %v534_v43 = vld [vmem:[%s2310_s3 + $0xc0] sm:$0xff]  ;;  %v533_v44 = vld [vmem:[%s2310_s3 + $0xb8] sm:$0xff] }
  0x70   : > { %589 = vmatpush1.msra.mxu0 %v489_v16  ;;  %v532_v45 = vld [vmem:[%s2310_s3 + $0xb0] sm:$0xff]  ;;  %v531_v46 = vld [vmem:[%s2310_s3 + $0xa8] sm:$0xff]  ;;  %v530_v47 = vld [vmem:[%s2310_s3 + $0xa0] sm:$0xff] }
  0x71   : > { %590 = vmatprep.subr.mxu0 %v487_v17  ;;  %v529_v48 = vld [vmem:[%s2310_s3 + $0x98] sm:$0xff]  ;;  %v528_v49 = vld [vmem:[%s2310_s3 + $0x90] sm:$0xff]  ;;  %v527_v50 = vld [vmem:[%s2310_s3 + $0x88] sm:$0xff] }
  0x72   : > { %591 = vmatpush1.msra.mxu0 %v486_v18  ;;  %v526_v51 = vld [vmem:[%s2310_s3 + $0x80] sm:$0xff]  ;;  %v525_v52 = vld [vmem:[%s2310_s3 + $0x78] sm:$0xff]  ;;  %v524_v53 = vld [vmem:[%s2310_s3 + $0x70] sm:$0xff] }
  0x73   : > { %592 = vmatprep.subr.mxu0 %v484_v19  ;;  %v523_v54 = vld [vmem:[%s2310_s3 + $0x68] sm:$0xff]  ;;  %v522_v55 = vld [vmem:[%s2310_s3 + $0x60] sm:$0xff]  ;;  %v521_v56 = vld [vmem:[%s2310_s3 + $0x58] sm:$0xff] }
  0x74   : > { %593 = vmatpush1.msra.mxu0 %v483_v20  ;;  %v520_v57 = vld [vmem:[%s2310_s3 + $0x50] sm:$0xff]  ;;  %v519_v58 = vld [vmem:[%s2310_s3 + $0x48] sm:$0xff]  ;;  %v518_v59 = vld [vmem:[%s2310_s3 + $0x40] sm:$0xff] }
  0x75   : > { %594 = vmatprep.subr.mxu0 %v481_v21  ;;  %v517_v60 = vld [vmem:[%s2310_s3 + $0x38] sm:$0xff]  ;;  %v516_v61 = vld [vmem:[%s2310_s3 + $0x30] sm:$0xff]  ;;  %v515_v62 = vld [vmem:[%s2310_s3 + $0x28] sm:$0xff] }
  0x76   : > { %595 = vmatpush1.msra.mxu0 %v480_v22  ;;  %v514_v63 = vld [vmem:[%s2310_s3 + $0x20] sm:$0xff]  ;;  %v513_v0 = vld [vmem:[%s2310_s3 + $0x18] sm:$0xff]  ;;  %v512_v1 = vld [vmem:[%s2310_s3 + $0x10] sm:$0xff] }
  0x77   : > { %596 = vmatprep.subr.mxu0 %v478_v23  ;;  %v511_v2 = vld [vmem:[%s2310_s3 + $0x8] sm:$0xff]  ;;  %v510_v3 = vld [vmem:[%s2310_s3] sm:$0xff]  ;;  %v506_v7 = vld [vmem:[#allocation3 + $0x160] sm:$0xff] }
  0x78   : > { %597 = vmatpush1.msra.mxu0 %v477_v24  ;;  %v2178_v4 = vld [vmem:[#allocation2] sm:$0xff]  ;;  %v509_v5 = vld [vmem:[#allocation3 + $0x178] sm:$0xff]  ;;  %v503_v8 = vld [vmem:[#allocation3 + $0x148] sm:$0xff] }
  0x79   : > { %598 = vmatprep.subr.mxu0 %v475_v25  ;;  %1511 = vmatpush3.msra.mxu1 %v509_v5  ;;  %v500_v9 = vld [vmem:[#allocation3 + $0x130] sm:$0xff]  ;;  %v497_v10 = vld [vmem:[#allocation3 + $0x118] sm:$0xff]  ;;  %v494_v11 = vld [vmem:[#allocation3 + $0x100] sm:$0xff] }
  0x7a   : > { %599 = vmatpush1.msra.mxu0 %v474_v26  ;;  %1512 = vmatprep.subr.mxu1 %v1898_v6  ;;  %v491_v12 = vld [vmem:[#allocation3 + $0xe8] sm:$0xff]  ;;  %v488_v13 = vld [vmem:[#allocation3 + $0xd0] sm:$0xff]  ;;  %v485_v14 = vld [vmem:[#allocation3 + $0xb8] sm:$0xff] }
  0x7b   : > { %600 = vmatprep.subr.mxu0 %v472_v27  ;;  %1513 = vmatpush3.msra.mxu1 %v506_v7  ;;  %v482_v15 = vld [vmem:[#allocation3 + $0xa0] sm:$0xff]  ;;  %v479_v16 = vld [vmem:[#allocation3 + $0x88] sm:$0xff]  ;;  %v476_v17 = vld [vmem:[#allocation3 + $0x70] sm:$0xff] }
  0x7c   : > { %601 = vmatpush1.msra.mxu0 %v471_v28  ;;  %1514 = vmatprep.subr.mxu1 %v1898_v6  ;;  %v473_v18 = vld [vmem:[#allocation3 + $0x58] sm:$0xff]  ;;  %v470_v19 = vld [vmem:[#allocation3 + $0x40] sm:$0xff]  ;;  %v467_v20 = vld [vmem:[#allocation3 + $0x28] sm:$0xff] }
  0x7d   : > { %602 = vmatprep.subr.mxu0 %v469_v29  ;;  %1515 = vmatpush3.msra.mxu1 %v503_v8  ;;  %v464_v21 = vld [vmem:[#allocation3 + $0x10] sm:$0xff]  ;;  %v557_v22 = vld [vmem:[#allocation5 + $0x78] sm:$0xff]  ;;  %v555_v24 = vld [vmem:[#allocation5 + $0x68] sm:$0xff] }
  0x7e   : > { %603 = vmatpush1.msra.mxu0 %v468_v30  ;;  %1516 = vmatprep.subr.mxu1 %v1898_v6  ;;  %v556_v23 = vld [vmem:[#allocation5 + $0x70] sm:$0xff]  ;;  %v554_v25 = vld [vmem:[#allocation5 + $0x60] sm:$0xff]  ;;  %v553_v26 = vld [vmem:[#allocation5 + $0x58] sm:$0xff] }
  0x7f   : > { %604 = vmatprep.subr.mxu0 %v466_v31  ;;  %1517 = vmatpush3.msra.mxu1 %v500_v9  ;;  %v552_v27 = vld [vmem:[#allocation5 + $0x50] sm:$0xff]  ;;  %v551_v28 = vld [vmem:[#allocation5 + $0x48] sm:$0xff]  ;;  %v550_v29 = vld [vmem:[#allocation5 + $0x40] sm:$0xff] }
  0x80   : > { %605 = vmatpush1.msra.mxu0 %v465_v32  ;;  %1518 = vmatprep.subr.mxu1 %v1898_v6  ;;  %v549_v30 = vld [vmem:[#allocation5 + $0x38] sm:$0xff]  ;;  %v548_v31 = vld [vmem:[#allocation5 + $0x30] sm:$0xff]  ;;  %v547_v32 = vld [vmem:[#allocation5 + $0x28] sm:$0xff] }
  0x81   : > { %606 = vmatprep.subr.mxu0 %v463_v33  ;;  %1519 = vmatpush3.msra.mxu1 %v497_v10  ;;  %v546_v33 = vld [vmem:[#allocation5 + $0x20] sm:$0xff]  ;;  %v918_v5 = vld [vmem:[#allocation7 + $0x130] sm:$0xff]  ;;  %v915_v7 = vld [vmem:[#allocation7 + $0x118] sm:$0xff] }
  0x82   : > { %607 = vmatpush1.msra.mxu0 %v462_v34  ;;  %1520 = vmatprep.subr.mxu1 %v1898_v6  ;;  %v545_v34 = vld [vmem:[#allocation5 + $0x18] sm:$0xff]  ;;  %v908_v10 = vld [vmem:[#allocation7 + $0xe0] sm:$0xff] }
  0x83   : > { %641 = vmatmul.mubr.f32.vlgmr.msra.gmra.mxu0 %v2078_v35  ;;  %717 = vmatprep.subr.mxu0 %v541_v36  ;;  %v543_v36 = vld [vmem:[#allocation5 + $0x8] sm:$0xff] }
  0x84   : > { %718 = vmatpush1.msra.mxu0 %v540_v37  ;;  %781 = vmatprep.mubr.f32.mxu0 %v1898_v6  ;;  %v542_v37 = vld [vmem:[#allocation5] sm:$0xff] }
  0x85   : > { %719 = vmatprep.subr.mxu0 %v539_v38  ;;  %1521 = vmatpush3.msra.mxu1 %v494_v11  ;;  %v926_v38 = vld [vmem:[#allocation7 + $0x170] sm:$0xff]  ;;  %v912_v11 = vld [vmem:[#allocation7 + $0x100] sm:$0xff] }
  0x86   : > { %720 = vmatpush1.msra.mxu0 %v538_v39  ;;  %1522 = vmatprep.subr.mxu1 %v1898_v6  ;;  %v925_v39 = vld [vmem:[#allocation7 + $0x168] sm:$0xff] }
  0x87   : > { %721 = vmatprep.subr.mxu0 %v537_v40  ;;  %1523 = vmatpush3.msra.mxu1 %v491_v12  ;;  %v923_v40 = vld [vmem:[#allocation7 + $0x158] sm:$0xff] }
  0x88   : > { %722 = vmatpush1.msra.mxu0 %v536_v41  ;;  %1524 = vmatprep.subr.mxu1 %v1898_v6  ;;  %v922_v41 = vld [vmem:[#allocation7 + $0x150] sm:$0xff]  ;;  %v907_v12 = vld [vmem:[#allocation7 + $0xd8] sm:$0xff] }
  0x89   : > { %723 = vmatprep.subr.mxu0 %v535_v42  ;;  %1525 = vmatpush3.msra.mxu1 %v488_v13  ;;  %v920_v42 = vld [vmem:[#allocation7 + $0x140] sm:$0xff]  ;;  %v905_v13 = vld [vmem:[#allocation7 + $0xc8] sm:$0xff] }
  0x8a   : > { %724 = vmatpush1.msra.mxu0 %v534_v43  ;;  %1526 = vmatprep.subr.mxu1 %v1898_v6  ;;  %v919_v43 = vld [vmem:[#allocation7 + $0x138] sm:$0xff] }
  0x8b   : > { %725 = vmatprep.subr.mxu0 %v533_v44  ;;  %1527 = vmatpush3.msra.mxu1 %v485_v14  ;;  %v917_v44 = vld [vmem:[#allocation7 + $0x128] sm:$0xff] }
  0x8c   : > { %726 = vmatpush1.msra.mxu0 %v532_v45  ;;  %1528 = vmatprep.subr.mxu1 %v1898_v6  ;;  %v916_v45 = vld [vmem:[#allocation7 + $0x120] sm:$0xff]  ;;  %v909_v14 = vld [vmem:[#allocation7 + $0xe8] sm:$0xff] }
  0x8d   : > { %727 = vmatprep.subr.mxu0 %v531_v46  ;;  %1529 = vmatpush3.msra.mxu1 %v482_v15  ;;  %v914_v46 = vld [vmem:[#allocation7 + $0x110] sm:$0xff]  ;;  %v904_v15 = vld [vmem:[#allocation7 + $0xc0] sm:$0xff] }
  0x8e   : > { %728 = vmatpush1.msra.mxu0 %v530_v47  ;;  %1530 = vmatprep.subr.mxu1 %v1898_v6  ;;  %v913_v47 = vld [vmem:[#allocation7 + $0x108] sm:$0xff] }
  0x8f   : > { %729 = vmatprep.subr.mxu0 %v529_v48  ;;  %1531 = vmatpush3.msra.mxu1 %v479_v16  ;;  %v911_v48 = vld [vmem:[#allocation7 + $0xf8] sm:$0xff]  ;;  %v902_v16 = vld [vmem:[#allocation7 + $0xb0] sm:$0xff] }
  0x90   : > { %730 = vmatpush1.msra.mxu0 %v528_v49  ;;  %1532 = vmatprep.subr.mxu1 %v1898_v6  ;;  %v910_v49 = vld [vmem:[#allocation7 + $0xf0] sm:$0xff] }
  0x91   : > { %731 = vmatprep.subr.mxu0 %v527_v50  ;;  %1533 = vmatpush3.msra.mxu1 %v476_v17  ;;  %v561_v50 = vlaneseq  ;;  %v906_v17 = vld [vmem:[#allocation7 + $0xd0] sm:$0xff] }
  0x92   : > { %732 = vmatpush1.msra.mxu0 %v526_v51  ;;  %1534 = vmatprep.subr.mxu1 %v1898_v6 }
  0x93   : > { %733 = vmatprep.subr.mxu0 %v525_v52  ;;  %1535 = vmatpush3.msra.mxu1 %v473_v18  ;;  %v2219_v51 = vshrl.u32 %v561_v50, 7  ;;  %v901_v18 = vld [vmem:[#allocation7 + $0xa8] sm:$0xff] }
  0x94   : > { %734 = vmatpush1.msra.mxu0 %v524_v53  ;;  %1536 = vmatprep.subr.mxu1 %v1898_v6  ;;  %v2225_v53 = vld [vmem:[%s2312_s5] sm:$0x7] }
  0x95   : > { %735 = vmatprep.subr.mxu0 %v523_v54  ;;  %1537 = vmatpush3.msra.mxu1 %v470_v19  ;;  %v563_v52 = vsub.s32 0, %v2219_v51  ;;  %v899_v19 = vld [vmem:[#allocation7 + $0x98] sm:$0xff] }
  0x96   : > { %736 = vmatpush1.msra.mxu0 %v522_v55  ;;  %1538 = vmatprep.subr.mxu1 %v1898_v6 }
  0x97   : > { %737 = vmatprep.subr.mxu0 %v521_v56  ;;  %1539 = vmatpush3.msra.mxu1 %v467_v20  ;;  %v564_v55 = vrot.slane %v2225_v53, %v563_v52  ;;  %v903_v20 = vld [vmem:[#allocation7 + $0xb8] sm:$0xff] }
  0x98   : > { %738 = vmatpush1.msra.mxu0 %v520_v57  ;;  %1540 = vmatprep.subr.mxu1 %v1898_v6 }
  0x99   : > { %739 = vmatprep.subr.mxu0 %v519_v58  ;;  %1541 = vmatpush3.msra.mxu1 %v464_v21  ;;  %v898_v21 = vld [vmem:[#allocation7 + $0x90] sm:$0xff] }
  0x9a   : > { %740 = vmatpush1.msra.mxu0 %v518_v59  ;;  %1543 = vmatmul.mubr.f32.vlgmr.msra.gmra.mxu1 %v2078_v35  ;;  %v544_v35 = vld [vmem:[#allocation5 + $0x10] sm:$0xff] }
  0x9b   : > { %741 = vmatprep.subr.mxu0 %v517_v60  ;;  %1545 = vmatprep.subr.mxu1 %v1898_v6 }
  0x9c   : > { %742 = vmatpush1.msra.mxu0 %v516_v61  ;;  %1577 = vmatprep.mubr.msk.f32.mxu1 %vm1899_vm0, %v1898_v6 }
  0x9d   : > { %743 = vmatprep.subr.mxu0 %v515_v62  ;;  %1546 = vmatpush3.msra.mxu1 %v557_v22  ;;  %v896_v22 = vld [vmem:[#allocation7 + $0x80] sm:$0xff] }
  0x9e   : > { %744 = vmatpush1.msra.mxu0 %v514_v63  ;;  %1547 = vmatprep.subr.mxu1 %v1898_v6 }
  0x9f   : > { %745 = vmatprep.subr.mxu0 %v513_v0  ;;  %1548 = vmatpush3.msra.mxu1 %v556_v23  ;;  %v900_v23 = vld [vmem:[#allocation7 + $0xa0] sm:$0xff] }
  0xa0   : > { %746 = vmatpush1.msra.mxu0 %v512_v1  ;;  %1549 = vmatprep.subr.mxu1 %v1898_v6  ;;  %v927_v1 = vld [vmem:[#allocation7 + $0x178] sm:$0xff] }
  0xa1   : > { %747 = vmatprep.subr.mxu0 %v511_v2  ;;  %1550 = vmatpush3.msra.mxu1 %v555_v24  ;;  %v924_v2 = vld [vmem:[#allocation7 + $0x160] sm:$0xff]  ;;  %v895_v24 = vld [vmem:[#allocation7 + $0x78] sm:$0xff] }
  0xa2   : > { %748 = vmatpush1.msra.mxu0 %v510_v3  ;;  %1551 = vmatprep.subr.mxu1 %v1898_v6  ;;  %v921_v3 = vld [vmem:[#allocation7 + $0x148] sm:$0xff] }
  0xa3   : > { %782 = vmatmul.mubr.f32.vlgmr.msra.gmra.mxu0 %v2178_v4  ;;  %1552 = vmatpush3.msra.mxu1 %v554_v25  ;;  %v893_v25 = vld [vmem:[#allocation7 + $0x68] sm:$0xff] }
  0xa4   : > { %1059 = vmatprep.mubr.f32.mxu0 %v1898_v6  ;;  %1553 = vmatprep.subr.mxu1 %v1898_v6 }
  0xa5   : > { %1554 = vmatpush3.msra.mxu1 %v553_v26  ;;  %995 = vmatprep.subr.mxu0 %v926_v38  ;;  %v897_v26 = vld [vmem:[#allocation7 + $0x88] sm:$0xff] }
  0xa6   : > { %1555 = vmatprep.subr.mxu1 %v1898_v6  ;;  %996 = vmatpush1.msra.mxu0 %v925_v39  ;;  %v885_v38 = vld [vmem:[#allocation7 + $0x28] sm:$0xff]  ;;  %v880_v39 = vld [vmem:[#allocation7] sm:$0xff] }
  0xa7   : > { %1556 = vmatpush3.msra.mxu1 %v552_v27  ;;  %997 = vmatprep.subr.mxu0 %v923_v40  ;;  %v892_v27 = vld [vmem:[#allocation7 + $0x60] sm:$0xff]  ;;  %v882_v40 = vld [vmem:[#allocation7 + $0x10] sm:$0xff] }
  0xa8   : > { %1557 = vmatprep.subr.mxu1 %v1898_v6  ;;  %998 = vmatpush1.msra.mxu0 %v922_v41  ;;  %v959_v41 = vld [vmem:[#allocation8 + $0xf8] sm:$0xff] }
  0xa9   : > { %1558 = vmatpush3.msra.mxu1 %v551_v28  ;;  %999 = vmatprep.subr.mxu0 %v920_v42  ;;  %v890_v28 = vld [vmem:[#allocation7 + $0x50] sm:$0xff]  ;;  %v567_v42 = vsub.s32 1, %v2219_v51 }
  0xaa   : > { %1559 = vmatprep.subr.mxu1 %v1898_v6  ;;  %1000 = vmatpush1.msra.mxu0 %v919_v43 }
  0xab   : > { %1560 = vmatpush3.msra.mxu1 %v550_v29  ;;  %1001 = vmatprep.subr.mxu0 %v917_v44  ;;  %v894_v29 = vld [vmem:[#allocation7 + $0x70] sm:$0xff]  ;;  %v568_v43 = vrot.slane %v2225_v53, %v567_v42 }
  0xac   : > { %1561 = vmatprep.subr.mxu1 %v1898_v6  ;;  %1002 = vmatpush1.msra.mxu0 %v916_v45 }
  0xad   : > { %1562 = vmatpush3.msra.mxu1 %v549_v30  ;;  %1003 = vmatprep.subr.mxu0 %v914_v46  ;;  %v889_v30 = vld [vmem:[#allocation7 + $0x48] sm:$0xff] }
  0xae   : > { %1563 = vmatprep.subr.mxu1 %v1898_v6  ;;  %1004 = vmatpush1.msra.mxu0 %v913_v47 }
  0xaf   : > { %1564 = vmatpush3.msra.mxu1 %v548_v31  ;;  %1005 = vmatprep.subr.mxu0 %v911_v48  ;;  %v887_v31 = vld [vmem:[#allocation7 + $0x38] sm:$0xff] }
  0xb0   : > { %1565 = vmatprep.subr.mxu1 %v1898_v6  ;;  %1006 = vmatpush1.msra.mxu0 %v910_v49  ;;  %v571_v49 = vsub.s32 2, %v2219_v51 }
  0xb1   : > { %1566 = vmatpush3.msra.mxu1 %v547_v32  ;;  %1007 = vmatprep.subr.mxu0 %v908_v10  ;;  %v891_v32 = vld [vmem:[#allocation7 + $0x58] sm:$0xff]  ;;  %v949_v10 = vld [vmem:[#allocation8 + $0xa8] sm:$0xff] }
  0xb2   : > { %1567 = vmatprep.subr.mxu1 %v1898_v6  ;;  %1008 = vmatpush1.msra.mxu0 %v907_v12  ;;  %v947_v12 = vld [vmem:[#allocation8 + $0x98] sm:$0xff] }
  0xb3   : > { %1568 = vmatpush3.msra.mxu1 %v546_v33  ;;  %1009 = vmatprep.subr.mxu0 %v905_v13  ;;  %v886_v33 = vld [vmem:[#allocation7 + $0x30] sm:$0xff] }
  0xb4   : > { %1569 = vmatprep.subr.mxu1 %v1898_v6  ;;  %1010 = vmatpush1.msra.mxu0 %v904_v15  ;;  %v946_v13 = vld [vmem:[#allocation8 + $0x90] sm:$0xff]  ;;  %v944_v15 = vld [vmem:[#allocation8 + $0x80] sm:$0xff] }
  0xb5   : > { %1570 = vmatpush3.msra.mxu1 %v545_v34  ;;  %1011 = vmatprep.subr.mxu0 %v902_v16  ;;  %v884_v34 = vld [vmem:[#allocation7 + $0x20] sm:$0xff]  ;;  %v943_v16 = vld [vmem:[#allocation8 + $0x78] sm:$0xff] }
  0xb6   : > { %1571 = vmatprep.subr.mxu1 %v1898_v6  ;;  %1012 = vmatpush1.msra.mxu0 %v901_v18  ;;  %v941_v18 = vld [vmem:[#allocation8 + $0x68] sm:$0xff] }
  0xb7   : > { %1572 = vmatpush3.msra.mxu1 %v544_v35  ;;  %1013 = vmatprep.subr.mxu0 %v899_v19  ;;  %v888_v35 = vld [vmem:[#allocation7 + $0x40] sm:$0xff] }
  0xb8   : > { %1573 = vmatprep.subr.mxu1 %v1898_v6  ;;  %1014 = vmatpush1.msra.mxu0 %v898_v21  ;;  %v940_v19 = vld [vmem:[#allocation8 + $0x60] sm:$0xff]  ;;  %v938_v21 = vld [vmem:[#allocation8 + $0x50] sm:$0xff] }
  0xb9   : > { %1574 = vmatpush3.msra.mxu1 %v543_v36  ;;  %1015 = vmatprep.subr.mxu0 %v896_v22  ;;  %v883_v36 = vld [vmem:[#allocation7 + $0x18] sm:$0xff]  ;;  %v937_v22 = vld [vmem:[#allocation8 + $0x48] sm:$0xff] }
  0xba   : > { %1575 = vmatprep.subr.mxu1 %v1898_v6  ;;  %1016 = vmatpush1.msra.mxu0 %v895_v24  ;;  %v935_v24 = vld [vmem:[#allocation8 + $0x38] sm:$0xff] }
  0xbb   : > { %1576 = vmatpush3.msra.mxu1 %v542_v37  ;;  %1017 = vmatprep.subr.mxu0 %v893_v25  ;;  %v881_v37 = vld [vmem:[#allocation7 + $0x8] sm:$0xff]  ;;  %v934_v25 = vld [vmem:[#allocation8 + $0x30] sm:$0xff] }
  0xbc   : > { %1580 = vmatprep.subr.mxu1 %v1898_v6  ;;  %1018 = vmatpush1.msra.mxu0 %v892_v27  ;;  %v932_v27 = vld [vmem:[#allocation8 + $0x20] sm:$0xff] }
  0xbd   : > { %1019 = vmatprep.subr.mxu0 %v890_v28  ;;  %v931_v28 = vld [vmem:[#allocation8 + $0x18] sm:$0xff] }
  0xbe   : > { %1020 = vmatpush1.msra.mxu0 %v889_v30  ;;  %v929_v30 = vld [vmem:[#allocation8 + $0x8] sm:$0xff] }
  0xbf   : > { %1021 = vmatprep.subr.mxu0 %v887_v31  ;;  %v928_v31 = vld [vmem:[#allocation8] sm:$0xff] }
  0xc0   : > { %1022 = vmatpush1.msra.mxu0 %v886_v33  ;;  %v975_v33 = vld [vmem:[#allocation10 + $0x78] sm:$0xff] }
  0xc1   : > { %1023 = vmatprep.subr.mxu0 %v884_v34  ;;  %v974_v34 = vld [vmem:[#allocation10 + $0x70] sm:$0xff] }
  0xc2   : > { %1024 = vmatpush1.msra.mxu0 %v883_v36  ;;  %v972_v36 = vld [vmem:[#allocation10 + $0x60] sm:$0xff] }
  0xc3   : > { %1025 = vmatprep.subr.mxu0 %v881_v37  ;;  %v971_v37 = vld [vmem:[#allocation10 + $0x58] sm:$0xff] }
  0xc4   : > { %1026 = vmatpush1.msra.mxu0 %v880_v39  ;;  %v969_v39 = vld [vmem:[#allocation10 + $0x48] sm:$0xff] }
  0xc5   : > { %1136 = vmatprep.subr.mxu0 %v959_v41  ;;  %v967_v41 = vld [vmem:[#allocation10 + $0x38] sm:$0xff] }
 0x143   : > { %v642_v54 = vpop.f32.mrf.mxu0 }
 0x144   : > { %v643_v57 = vadd.f32 %v642_v54, %v564_v55  ;;  %v572_v54 = vrot.slane %v2225_v53, %v571_v49  ;;  %v956_v53 = vld [vmem:[#allocation8 + $0xe0] sm:$0xff] }
 0x145   : > { %v2230_v56 = vpop.f32.mrf.mxu0 }
 0x146   : > { %v645_v45 = vadd.f32 %v2230_v56, %v568_v43  ;;  %v966_v43 = vld [vmem:[#allocation10 + $0x30] sm:$0xff] }
 0x15a   : > { %v2240_v8 = vpop.f32.mrf.mxu1 }
 0x15b   : > { %v714_v55 = vadd.f32 %v2240_v8, %v572_v54  ;;  %v951_v8 = vld [vmem:[#allocation8 + $0xb8] sm:$0xff] }
 0x15c   : > { %v1544_v9 = vpop.f32.mrf.mxu1 }
 0x15d   : > { %v950_v9 = vld [vmem:[#allocation8 + $0xb0] sm:$0xff] }
 0x163   : > { %v783_v58 = vpop.f32.mrf.mxu0 }
 0x164   : > { %v788_v59 = vadd.f32 %v783_v58, %v643_v57 }
 0x165   : > { %v785_v44 = vpop.f32.mrf.mxu0 }
 0x166   : > { %v1435_v60 = vmul.f32 -1.442695, %v788_v59  ;;  %v795_v46 = vadd.f32 %v785_v44, %v645_v45  ;;  %v965_v44 = vld [vmem:[#allocation10 + $0x28] sm:$0xff]  ;;  %v964_v45 = vld [vmem:[#allocation10 + $0x20] sm:$0xff] }
 0x168   : > { %1717 = vpow2.f32 %v1435_v60  ;;  %v1436_v47 = vmul.f32 -1.442695, %v795_v46  ;;  %v963_v46 = vld [vmem:[#allocation10 + $0x18] sm:$0xff] }
 0x175   : > { %v1718_v61 = vpop.eup %1717 }
 0x176   : > { %v792_v62 = vadd.f32 1.0, %v1718_v61 }
 0x178   : > { %1719 = vrcp.f32 %v792_v62 }
 0x179   : > { %1721 = vpow2.f32 %v1436_v47  ;;  %v962_v47 = vld [vmem:[#allocation10 + $0x10] sm:$0xff] }
 0x185   : > { %v1720_v63 = vpop.eup %1719 }
 0x186   : > { %v802_v0 = vmul.f32 %v1720_v63, %v2178_v4  ;;  %v1722_v48 = vpop.eup %1721 }
 0x187   : > { %v799_v50 = vadd.f32 1.0, %v1722_v48  ;;  %v961_v48 = vld [vmem:[#allocation10 + $0x8] sm:$0xff] }
 0x188   : > { %1578 = vmatmul.mubr.f32.vlgmr.msra.gmra.mxu1 %v802_v0 }
 0x189   : > { %1581 = vmatpush3.msra.mxu1 %v927_v1  ;;  %1612 = vmatprep.mubr.msk.f32.mxu1 %vm1899_vm0, %v1898_v6  ;;  %1723 = vrcp.f32 %v799_v50  ;;  %v958_v1 = vld [vmem:[#allocation8 + $0xf0] sm:$0xff]  ;;  %v960_v50 = vld [vmem:[#allocation10] sm:$0xff] }
 0x18a   : > { %1582 = vmatprep.subr.mxu1 %v1898_v6 }
 0x18b   : > { %1583 = vmatpush3.msra.mxu1 %v924_v2  ;;  %v957_v2 = vld [vmem:[#allocation8 + $0xe8] sm:$0xff] }
 0x18c   : > { %1584 = vmatprep.subr.mxu1 %v1898_v6 }
 0x18d   : > { %1585 = vmatpush3.msra.mxu1 %v921_v3  ;;  %v955_v3 = vld [vmem:[#allocation8 + $0xd8] sm:$0xff] }
 0x18e   : > { %1586 = vmatprep.subr.mxu1 %v1898_v6 }
 0x18f   : > { %1587 = vmatpush3.msra.mxu1 %v918_v5  ;;  %v954_v5 = vld [vmem:[#allocation8 + $0xd0] sm:$0xff] }
 0x190   : > { %1588 = vmatprep.subr.mxu1 %v1898_v6 }
 0x191   : > { %1589 = vmatpush3.msra.mxu1 %v915_v7  ;;  %v953_v7 = vld [vmem:[#allocation8 + $0xc8] sm:$0xff] }
 0x192   : > { %1590 = vmatprep.subr.mxu1 %v1898_v6 }
 0x193   : > { %1591 = vmatpush3.msra.mxu1 %v912_v11  ;;  %v948_v11 = vld [vmem:[#allocation8 + $0xa0] sm:$0xff] }
 0x194   : > { %1592 = vmatprep.subr.mxu1 %v1898_v6 }
 0x195   : > { %1593 = vmatpush3.msra.mxu1 %v909_v14  ;;  %v945_v14 = vld [vmem:[#allocation8 + $0x88] sm:$0xff] }
 0x196   : > { %1594 = vmatprep.subr.mxu1 %v1898_v6  ;;  %v1724_v60 = vpop.eup %1723 }
 0x197   : > { %1595 = vmatpush3.msra.mxu1 %v906_v17  ;;  %v875_v56 = vsub.f32 1.0, %v1724_v60  ;;  %v942_v17 = vld [vmem:[#allocation8 + $0x70] sm:$0xff] }
 0x198   : > { %1596 = vmatprep.subr.mxu1 %v1898_v6 }
 0x199   : > { %1597 = vmatpush3.msra.mxu1 %v903_v20  ;;  %v876_v62 = vmul.f32 %v875_v56, %v2178_v4  ;;  %v952_v4 = vld [vmem:[#allocation8 + $0xc0] sm:$0xff]  ;;  %v939_v20 = vld [vmem:[#allocation8 + $0x58] sm:$0xff] }
 0x19a   : > { %1598 = vmatprep.subr.mxu1 %v1898_v6 }
 0x19b   : > { %1599 = vmatpush3.msra.mxu1 %v900_v23  ;;  %v936_v23 = vld [vmem:[#allocation8 + $0x40] sm:$0xff] }
 0x19c   : > { %1600 = vmatprep.subr.mxu1 %v1898_v6 }
 0x19d   : > { %1601 = vmatpush3.msra.mxu1 %v897_v26  ;;  %v933_v26 = vld [vmem:[#allocation8 + $0x28] sm:$0xff] }
 0x19e   : > { %1602 = vmatprep.subr.mxu1 %v1898_v6 }
 0x19f   : > { %1603 = vmatpush3.msra.mxu1 %v894_v29  ;;  %v930_v29 = vld [vmem:[#allocation8 + $0x10] sm:$0xff] }
 0x1a0   : > { %1604 = vmatprep.subr.mxu1 %v1898_v6 }
 0x1a1   : > { %1605 = vmatpush3.msra.mxu1 %v891_v32  ;;  %v2267_v32 = vld [vmem:[#allocation2 + $0x8] sm:$0xff] }
 0x1a2   : > { %1606 = vmatprep.subr.mxu1 %v1898_v6 }
 0x1a3   : > { %1607 = vmatpush3.msra.mxu1 %v888_v35  ;;  %v973_v35 = vld [vmem:[#allocation10 + $0x68] sm:$0xff] }
 0x1a4   : > { %1608 = vmatprep.subr.mxu1 %v1898_v6 }
 0x1a5   : > { %1609 = vmatpush3.msra.mxu1 %v885_v38  ;;  %v970_v38 = vld [vmem:[#allocation10 + $0x50] sm:$0xff] }
 0x1a6   : > { %1610 = vmatprep.subr.mxu1 %v1898_v6 }
 0x1a7   : > { %1611 = vmatpush3.msra.mxu1 %v882_v40  ;;  %v968_v40 = vld [vmem:[#allocation10 + $0x40] sm:$0xff] }
 0x1a8   : > { %1615 = vmatprep.subr.mxu1 %v1898_v6 }
 0x248   : > { %v869_v57 = vpop.f32.mrf.mxu1 }
 0x249   : > { %v873_v58 = vadd.f32 %v869_v57, %v714_v55  ;;  %v976_v57 = vld [vmem:[%s2316_s9] sm:$0x7] }
 0x24a   : > { %v1579_v59 = vpop.f32.mrf.mxu1 }
 0x24b   : > { %1725 = vtanh.f32 %v873_v58  ;;  %v983_v59 = vrot.slane %v976_v57, %v563_v52 }
 0x258   : > { %v1726_v61 = vpop.eup %1725 }
 0x259   : > { %v877_v63 = vmul.f32 %v1726_v61, %v1724_v60 }
 0x25b   : > { %v878_v0 = vadd.f32 %v877_v63, %v876_v62 }
 0x25d   : > { %879 = vst [vmem:[#allocation2] sm:$0xff] %v878_v0  ;;  %1060 = vmatmul.mubr.f32.vlgmr.msra.gmra.mxu0 %v878_v0  ;;  %1613 = vmatmul.mubr.f32.vlgmr.msra.gmra.mxu1 %v878_v0 }
 0x25e   : > { %1137 = vmatpush1.msra.mxu0 %v958_v1  ;;  %1200 = vmatprep.mubr.f32.mxu0 %v1898_v6 }
 0x25f   : > { %1138 = vmatprep.subr.mxu0 %v957_v2  ;;  %1647 = vmatprep.mubr.msk.f32.mxu1 %vm1899_vm0, %v1898_v6 }
 0x260   : > { %1139 = vmatpush1.msra.mxu0 %v956_v53  ;;  %1616 = vmatpush3.msra.mxu1 %v975_v33  ;;  %v987_v53 = vrot.slane %v976_v57, %v567_v42 }
 0x261   : > { %1140 = vmatprep.subr.mxu0 %v955_v3  ;;  %1617 = vmatprep.subr.mxu1 %v1898_v6 }
 0x262   : > { %1141 = vmatpush1.msra.mxu0 %v954_v5  ;;  %1618 = vmatpush3.msra.mxu1 %v974_v34 }
 0x263   : > { %1142 = vmatprep.subr.mxu0 %v953_v7  ;;  %1619 = vmatprep.subr.mxu1 %v1898_v6 }
 0x264   : > { %1143 = vmatpush1.msra.mxu0 %v952_v4  ;;  %1620 = vmatpush3.msra.mxu1 %v973_v35 }
 0x265   : > { %1144 = vmatprep.subr.mxu0 %v951_v8  ;;  %1621 = vmatprep.subr.mxu1 %v1898_v6 }
 0x266   : > { %1145 = vmatpush1.msra.mxu0 %v950_v9  ;;  %1622 = vmatpush3.msra.mxu1 %v972_v36  ;;  %v991_v9 = vrot.slane %v976_v57, %v571_v49 }
 0x267   : > { %1146 = vmatprep.subr.mxu0 %v949_v10  ;;  %1623 = vmatprep.subr.mxu1 %v1898_v6 }
 0x268   : > { %1147 = vmatpush1.msra.mxu0 %v948_v11  ;;  %1624 = vmatpush3.msra.mxu1 %v971_v37 }
 0x269   : > { %1148 = vmatprep.subr.mxu0 %v947_v12  ;;  %1625 = vmatprep.subr.mxu1 %v1898_v6 }
 0x26a   : > { %1149 = vmatpush1.msra.mxu0 %v946_v13  ;;  %1626 = vmatpush3.msra.mxu1 %v970_v38 }
 0x26b   : > { %1150 = vmatprep.subr.mxu0 %v945_v14  ;;  %1627 = vmatprep.subr.mxu1 %v1898_v6 }
 0x26c   : > { %1151 = vmatpush1.msra.mxu0 %v944_v15  ;;  %1628 = vmatpush3.msra.mxu1 %v969_v39 }
 0x26d   : > { %1152 = vmatprep.subr.mxu0 %v943_v16  ;;  %1629 = vmatprep.subr.mxu1 %v1898_v6 }
 0x26e   : > { %1153 = vmatpush1.msra.mxu0 %v942_v17  ;;  %1630 = vmatpush3.msra.mxu1 %v968_v40 }
 0x26f   : > { %1154 = vmatprep.subr.mxu0 %v941_v18  ;;  %1631 = vmatprep.subr.mxu1 %v1898_v6 }
 0x270   : > { %1155 = vmatpush1.msra.mxu0 %v940_v19  ;;  %1632 = vmatpush3.msra.mxu1 %v967_v41 }
 0x271   : > { %1156 = vmatprep.subr.mxu0 %v939_v20  ;;  %1633 = vmatprep.subr.mxu1 %v1898_v6 }
 0x272   : > { %1157 = vmatpush1.msra.mxu0 %v938_v21  ;;  %1634 = vmatpush3.msra.mxu1 %v966_v43 }
 0x273   : > { %1158 = vmatprep.subr.mxu0 %v937_v22  ;;  %1635 = vmatprep.subr.mxu1 %v1898_v6 }
 0x274   : > { %1159 = vmatpush1.msra.mxu0 %v936_v23  ;;  %1636 = vmatpush3.msra.mxu1 %v965_v44 }
 0x275   : > { %1160 = vmatprep.subr.mxu0 %v935_v24  ;;  %1637 = vmatprep.subr.mxu1 %v1898_v6 }
 0x276   : > { %1161 = vmatpush1.msra.mxu0 %v934_v25  ;;  %1638 = vmatpush3.msra.mxu1 %v964_v45 }
 0x277   : > { %1162 = vmatprep.subr.mxu0 %v933_v26  ;;  %1639 = vmatprep.subr.mxu1 %v1898_v6 }
 0x278   : > { %1163 = vmatpush1.msra.mxu0 %v932_v27  ;;  %1640 = vmatpush3.msra.mxu1 %v963_v46 }
 0x279   : > { %1164 = vmatprep.subr.mxu0 %v931_v28  ;;  %1641 = vmatprep.subr.mxu1 %v1898_v6 }
 0x27a   : > { %1165 = vmatpush1.msra.mxu0 %v930_v29  ;;  %1642 = vmatpush3.msra.mxu1 %v962_v47 }
 0x27b   : > { %1166 = vmatprep.subr.mxu0 %v929_v30  ;;  %1643 = vmatprep.subr.mxu1 %v1898_v6 }
 0x27c   : > { %1167 = vmatpush1.msra.mxu0 %v928_v31  ;;  %1644 = vmatpush3.msra.mxu1 %v961_v48 }
 0x27d   : > { %1201 = vmatmul.mubr.f32.vlgmr.msra.gmra.mxu0 %v2267_v32  ;;  %1645 = vmatprep.subr.mxu1 %v1898_v6 }
 0x27e   : > { %1646 = vmatpush3.msra.mxu1 %v960_v50 }
 0x31d   : > { %v1132_v54 = vpop.f32.mrf.mxu1  ;;  %v1061_v58 = vpop.f32.mrf.mxu0 }
 0x31e   : > { %v1062_v56 = vadd.f32 %v1061_v58, %v983_v59  ;;  %v1133_v10 = vadd.f32 %v1132_v54, %v991_v9 }
 0x31f   : > { %v1614_v55 = vpop.f32.mrf.mxu1  ;;  %v1063_v60 = vpop.f32.mrf.mxu0 }
 0x320   : > { %v1064_v5 = vadd.f32 %v1063_v60, %v987_v53 }
 0x33d   : > { %v1202_v61 = vpop.f32.mrf.mxu0 }
 0x33e   : > { %v1207_v62 = vadd.f32 %v1202_v61, %v1062_v56 }
 0x33f   : > { %v1204_v3 = vpop.f32.mrf.mxu0 }
 0x340   : > { %v1437_v63 = vmul.f32 -1.442695, %v1207_v62  ;;  %v1214_v7 = vadd.f32 %v1204_v3, %v1064_v5 }
 0x342   : > { %1727 = vpow2.f32 %v1437_v63  ;;  %v1438_v52 = vmul.f32 -1.442695, %v1214_v7 }
 0x34f   : > { %v1728_v0 = vpop.eup %1727 }
 0x350   : > { %v1211_v6 = vadd.f32 1.0, %v1728_v0 }
 0x352   : > { %1729 = vrcp.f32 %v1211_v6 }
 0x353   : > { %1731 = vpow2.f32 %v1438_v52 }
 0x35f   : > { %v1730_v1 = vpop.eup %1729 }
 0x360   : > { %v1221_v2 = vmul.f32 %v1730_v1, %v2267_v32  ;;  %v1732_v4 = vpop.eup %1731 }
 0x361   : > { %v1218_v8 = vadd.f32 1.0, %v1732_v4 }
 0x362   : > { %1648 = vmatmul.mubr.f32.vlgmr.msra.gmra.mxu1 %v1221_v2 }
 0x363   : > { %1733 = vrcp.f32 %v1218_v8 }
 0x370   : > { %v1734_v14 = vpop.eup %1733 }
 0x371   : > { %v1294_v15 = vsub.f32 1.0, %v1734_v14 }
 0x373   : > { %v1295_v16 = vmul.f32 %v1294_v15, %v2267_v32 }
 0x422   : > { %v1288_v11 = vpop.f32.mrf.mxu1 }
 0x423   : > { %v1292_v12 = vadd.f32 %v1288_v11, %v1133_v10 }
 0x424   : > { %v1649_v13 = vpop.f32.mrf.mxu1 }
 0x425   : > { %1735 = vtanh.f32 %v1292_v12 }
 0x432   : > { %v1736_v42 = vpop.eup %1735 }
 0x433   : > { %v1296_v17 = vmul.f32 %v1736_v42, %v1734_v14  ;;  %1303 = sbr.rel (%p1439_p8) target bundleno = 1088 (0x440), region = 88 }
 0x435   : > { %v1297_v18 = vadd.f32 %v1296_v17, %v1295_v16 }
 0x437   : > { %1298 = vst [vmem:[#allocation2 + $0x8] sm:$0xff] %v1297_v18  ;;  %1299 = vst [vmem:[%s2065_s23] sm:$0xff] %v1297_v18 }
 0x438   : > { %v1304_v51 = vld [vmem:[#allocation2] sm:$0xff] }
 0x439   : > { %1306 = vst [vmem:[%s2318_s11] sm:$0xff] %v1304_v51 }
 0x43e   : > { %v1305_v49 = vld [vmem:[#allocation2 + $0x8] sm:$0xff] }
 0x43f   : > { %1307 = vst [vmem:[%s2318_s11 + $0x8] sm:$0xff] %v1305_v49 }
 0x440 PF: > { %s25_s17 = sadd.s32 1, %s1885_s17  }
 0x441   : > { %p22_p9 = scmp.ge.s32.totalorder %s25_s17, 10  }
 0x443   :  { %24 = sbr.rel (!%p22_p9) target bundleno = 3 (0x3), region = 128 }
 0x448   :  { %1333 = vsyncpa [#allocation4], 1 }
 0x449   :  { %1335 = vsyncpa [#allocation4 + $0x1], 1 }
 0x44a   :  { %1336 = vsyncpa [#allocation6], 1 }
 0x44b   :  { %1337 = vsyncpa [#allocation9], 1 }

</bundles_post_ra>
